<compile_context>
chip_gen: v5e
topology: v5e:2x2
jax: 0.10.0
libtpu: 0.0.40
codegen_flags: <defaults>
</compile_context>

<pallas_src>
import functools
import math

import jax
import jax.numpy as jnp
from jax.experimental import pallas as pl
from jax.experimental.pallas import tpu as pltpu


# ------------------------------ tile helper -------------------------------- #

def _pick_tile(dim, cap, align):
    """Largest tile <= cap that divides dim (aligned), else the full dim."""
    if dim <= cap:
        return dim
    t = (cap // align) * align
    while t >= align:
        if dim % t == 0:
            return t
        t -= align
    return dim


def _gelu_tanh(y):
    # TODO(synk): exact erf-GELU approximated with the tanh formulation for
    # guaranteed in-kernel TPU lowering (tanh runs on the EUP slot).
    return 0.5 * y * (1.0 + jnp.tanh(0.7978845608028654
                                     * (y + 0.044715 * y * y * y)))


# ----------------------------- Pallas kernels ------------------------------ #

def _matmul_kernel(x_ref, w_ref, b_ref, o_ref, acc_ref, *, activation):
    """Tiled (tm,tk)@(tk,tn) with f32 accumulator; bias (+GELU) epilogue."""
    @pl.when(pl.program_id(2) == 0)
    def _():
        acc_ref[...] = jnp.zeros_like(acc_ref)

    acc_ref[...] += jnp.dot(x_ref[...], w_ref[...],
                            preferred_element_type=jnp.float32)

    @pl.when(pl.program_id(2) == pl.num_programs(2) - 1)
    def _():
        y = acc_ref[...] + b_ref[...]
        if activation == "gelu":
            y = _gelu_tanh(y)
        o_ref[...] = y.astype(o_ref.dtype)


def _matmul_single_k_kernel(x_ref, w_ref, b_ref, o_ref, *, activation):
    """K fits a single tile: no scratch accumulator / no pl.when round-trip."""
    y = jnp.dot(x_ref[...], w_ref[...],
                preferred_element_type=jnp.float32) + b_ref[...]
    if activation == "gelu":
        y = _gelu_tanh(y)
    o_ref[...] = y.astype(o_ref.dtype)


def _layernorm_kernel(x_ref, g_ref, b_ref, o_ref):
    x = x_ref[...].astype(jnp.float32)
    mean = jnp.mean(x, axis=-1, keepdims=True)
    var = jnp.mean(jnp.square(x - mean), axis=-1, keepdims=True)
    y = (x - mean) * jax.lax.rsqrt(var + 1e-12)
    o_ref[...] = (y * g_ref[...] + b_ref[...]).astype(o_ref.dtype)


def _add_layernorm_kernel(x_ref, r_ref, g_ref, b_ref, o_ref):
    x = x_ref[...].astype(jnp.float32) + r_ref[...].astype(jnp.float32)
    mean = jnp.mean(x, axis=-1, keepdims=True)
    var = jnp.mean(jnp.square(x - mean), axis=-1, keepdims=True)
    y = (x - mean) * jax.lax.rsqrt(var + 1e-12)
    o_ref[...] = (y * g_ref[...] + b_ref[...]).astype(o_ref.dtype)


def _add_sigmoid_kernel(a_ref, b_ref, o_ref):
    o_ref[...] = jax.nn.sigmoid(a_ref[...].astype(jnp.float32)
                                + b_ref[...].astype(jnp.float32))


def _attention_body(qkv_ref, ctx_ref, probs_ref, *, scale, heads, head_dim,
                    hidden, seq, n_local, local_ctx, global_ctx):
    """One batch element per grid step; heads handled in VMEM.

    qkv_ref : (S, 3D) bf16 (fused Q|K|V projection rows of this batch element)
    ctx_ref : (S, D)  bf16  -- lane-dense context output
    probs_ref: (1, H, S, S) f32 or None
    """
    b = pl.program_id(0)
    # first n_local batch elements use the local context, the rest the global.
    ctx_size = jnp.where(b < n_local, local_ctx, global_ctx)
    row = jax.lax.broadcasted_iota(jnp.int32, (seq, seq), 0)
    col = jax.lax.broadcasted_iota(jnp.int32, (seq, seq), 1)
    # banded mask, built in-kernel, shared by all heads, as an additive bias
    mask_bias = jnp.where(jnp.abs(row - col) < ctx_size, 0.0, -1e9)

    qkv = qkv_ref[...]                              # (S, 3D) bf16
    ctx_heads = []
    probs_heads = []
    for h in range(heads):
        q = qkv[:, h * head_dim:(h + 1) * head_dim]
        k = qkv[:, hidden + h * head_dim: hidden + (h + 1) * head_dim]
        v = qkv[:, 2 * hidden + h * head_dim: 2 * hidden + (h + 1) * head_dim]
        # contract last dims directly (no k.T materialization)
        s = jax.lax.dot_general(q, k, (((1,), (1,)), ((), ())),
                                preferred_element_type=jnp.float32) * scale
        s = s + mask_bias
        m = jnp.max(s, axis=-1, keepdims=True)
        e = jnp.exp(s - m)
        p = e * pl.reciprocal(jnp.sum(e, axis=-1, keepdims=True), approx=True)
        probs_heads.append(p)
        ctx_heads.append(jnp.dot(p.astype(qkv.dtype), v,
                                 preferred_element_type=jnp.float32))
    # single lane-dense (S, D) store
    ctx_ref[...] = jnp.concatenate(ctx_heads, axis=-1).astype(ctx_ref.dtype)
    if probs_ref is not None:
        probs_ref[0] = jnp.stack(probs_heads, axis=0)
    # TODO(synk): for long sequences convert to a KV-tiled, band-skipping
    # flash-style loop so the full (S,S) score tile never has to be resident.


# ----------------------------- Pallas wrappers ----------------------------- #

def linear(x2d, w, b, activation=None, out_dtype=jnp.bfloat16,
           tm_cap=256, tn_cap=256, tk_cap=512):
    M, K = x2d.shape
    _, N = w.shape
    tm = _pick_tile(M, tm_cap, 8)
    tn = _pick_tile(N, tn_cap, 128)
    tk = _pick_tile(K, tk_cap, 128)
    gk = K // tk
    bias = b.reshape(1, N).astype(jnp.float32)
    if gk == 1:
        kernel = functools.partial(_matmul_single_k_kernel,
                                   activation=activation)
        return pl.pallas_call(
            kernel,
            out_shape=jax.ShapeDtypeStruct((M, N), out_dtype),
            grid=(M // tm, N // tn),
            in_specs=[
                pl.BlockSpec((tm, K), lambda i, j: (i, 0)),
                pl.BlockSpec((K, tn), lambda i, j: (0, j)),
                pl.BlockSpec((1, tn), lambda i, j: (0, j)),
            ],
            out_specs=pl.BlockSpec((tm, tn), lambda i, j: (i, j)),
            compiler_params=pltpu.CompilerParams(
                dimension_semantics=("parallel", "parallel")),
        )(x2d, w, bias)
    kernel = functools.partial(_matmul_kernel, activation=activation)
    return pl.pallas_call(
        kernel,
        out_shape=jax.ShapeDtypeStruct((M, N), out_dtype),
        grid=(M // tm, N // tn, gk),
        in_specs=[
            pl.BlockSpec((tm, tk), lambda i, j, k: (i, k)),
            pl.BlockSpec((tk, tn), lambda i, j, k: (k, j)),
            pl.BlockSpec((1, tn), lambda i, j, k: (0, j)),
        ],
        out_specs=pl.BlockSpec((tm, tn), lambda i, j, k: (i, j)),
        scratch_shapes=[pltpu.VMEM((tm, tn), jnp.float32)],
        compiler_params=pltpu.CompilerParams(
            dimension_semantics=("parallel", "parallel", "arbitrary")),
    )(x2d, w, bias)


def layernorm(x2d, g, b, out_dtype=jnp.bfloat16, tm_cap=512):
    M, D = x2d.shape
    tm = _pick_tile(M, tm_cap, 8)
    return pl.pallas_call(
        _layernorm_kernel,
        out_shape=jax.ShapeDtypeStruct((M, D), out_dtype),
        grid=(M // tm,),
        in_specs=[
            pl.BlockSpec((tm, D), lambda i: (i, 0)),
            pl.BlockSpec((1, D), lambda i: (0, 0)),
            pl.BlockSpec((1, D), lambda i: (0, 0)),
        ],
        out_specs=pl.BlockSpec((tm, D), lambda i: (i, 0)),
        compiler_params=pltpu.CompilerParams(dimension_semantics=("parallel",)),
    )(x2d, g, b)


def add_layernorm(x2d, r2d, g, b, out_dtype=jnp.bfloat16, tm_cap=512):
    M, D = x2d.shape
    tm = _pick_tile(M, tm_cap, 8)
    return pl.pallas_call(
        _add_layernorm_kernel,
        out_shape=jax.ShapeDtypeStruct((M, D), out_dtype),
        grid=(M // tm,),
        in_specs=[
            pl.BlockSpec((tm, D), lambda i: (i, 0)),
            pl.BlockSpec((tm, D), lambda i: (i, 0)),
            pl.BlockSpec((1, D), lambda i: (0, 0)),
            pl.BlockSpec((1, D), lambda i: (0, 0)),
        ],
        out_specs=pl.BlockSpec((tm, D), lambda i: (i, 0)),
        compiler_params=pltpu.CompilerParams(dimension_semantics=("parallel",)),
    )(x2d, r2d, g, b)


def add_sigmoid(a2d, b2d, tm_cap=512):
    M, N = a2d.shape
    tm = _pick_tile(M, tm_cap, 8)
    return pl.pallas_call(
        _add_sigmoid_kernel,
        out_shape=jax.ShapeDtypeStruct((M, N), jnp.float32),
        grid=(M // tm,),
        in_specs=[pl.BlockSpec((tm, N), lambda i: (i, 0)),
                  pl.BlockSpec((tm, N), lambda i: (i, 0))],
        out_specs=pl.BlockSpec((tm, N), lambda i: (i, 0)),
        compiler_params=pltpu.CompilerParams(dimension_semantics=("parallel",)),
    )(a2d, b2d)


def make_attention(BB, S, D, H, *, want_probs, **static):
    """Build the per-batch-element attention pallas_call (grid over 2B)."""
    if want_probs:
        def kernel(qkv_ref, ctx_ref, probs_ref):
            _attention_body(qkv_ref, ctx_ref, probs_ref, **static)
        out_shape = (jax.ShapeDtypeStruct((BB * S, D), jnp.bfloat16),
                     jax.ShapeDtypeStruct((BB, H, S, S), jnp.float32))
        out_specs = (pl.BlockSpec((S, D), lambda b: (b, 0)),
                     pl.BlockSpec((1, H, S, S), lambda b: (b, 0, 0, 0)))
    else:
        def kernel(qkv_ref, ctx_ref):
            _attention_body(qkv_ref, ctx_ref, None, **static)
        out_shape = jax.ShapeDtypeStruct((BB * S, D), jnp.bfloat16)
        out_specs = pl.BlockSpec((S, D), lambda b: (b, 0))
    return pl.pallas_call(
        kernel,
        out_shape=out_shape,
        grid=(BB,),
        in_specs=[pl.BlockSpec((S, 3 * D), lambda b: (b, 0))],
        out_specs=out_specs,
        compiler_params=pltpu.CompilerParams(dimension_semantics=("parallel",)),
    )


# ----------------------------- model (glue) -------------------------------- #

def encoder_layers_forward(params, x2, cfg, BB, S, n_local_batch,
                           output_attentions=True):
    """Batched encoder layers over the concatenated (local|global) batch.

    x2: (BB*S, D) bf16 already embedded+LayerNormed.
    """
    D = x2.shape[-1]
    H = cfg["num_attention_heads"]
    Dh = D // H

    attn_fn = make_attention(
        BB, S, D, H, want_probs=output_attentions,
        scale=1.0 / math.sqrt(Dh), heads=H, head_dim=Dh, hidden=D, seq=S,
        n_local=n_local_batch,
        local_ctx=cfg["local_context_length"],
        global_ctx=cfg["global_context_length"])

    attentions = []
    for layer in params["layers"]:
        resid = x2                                            # (M, D) bf16
        qkv = linear(x2, layer["qkv_w"], layer["qkv_b"])      # fused QKV (M, 3D)
        if output_attentions:
            ctx, probs = attn_fn(qkv)
            attentions.append(probs)                          # (BB, H, S, S)
        else:
            ctx = attn_fn(qkv)
        attn_out = linear(ctx, layer["ao_w"], layer["ao_b"])
        x2 = add_layernorm(attn_out, resid,
                           layer["attn_ln_g"], layer["attn_ln_b"])
        inter = linear(x2, layer["i_w"], layer["i_b"], activation="gelu")
        ffn_out = linear(inter, layer["o_w"], layer["o_b"])
        x2 = add_layernorm(ffn_out, x2, layer["out_ln_g"], layer["out_ln_b"])

    last = linear(x2, params["proj_w"], params["proj_b"], out_dtype=jnp.float32)
    return last, attentions


def transformer_multi_scale_attention(params, hidden_states, cfg,
                                      output_attentions=True):
    B, S, D = hidden_states.shape
    M = B * S

    # embeddings computed ONCE (identical for local and global passes):
    # input features + absolute position embeddings, LayerNorm
    h = (hidden_states + params["pos_emb"][:S][None]).astype(jnp.bfloat16)
    emb = layernorm(h.reshape(M, D), params["emb_ln_g"], params["emb_ln_b"])

    # run local-mask and global-mask passes as one batched pass (shared encoder)
    x_cat = jnp.concatenate([emb, emb], axis=0)               # (2M, D)
    last, attn_layers = encoder_layers_forward(
        params, x_cat, cfg, BB=2 * B, S=S, n_local_batch=B,
        output_attentions=output_attentions)

    last = last.reshape(2 * B, S, -1)
    lo = last[:B]                                 # local-mask pass output
    go = last[B:]                                 # global-mask pass output
    O = lo.shape[-1]
    out = add_sigmoid(lo.reshape(B * S, O), go.reshape(B * S, O)).reshape(B, S, O)

    if not output_attentions:
        return out, None
    local_maps = [p[:B] for p in attn_layers]     # L x (B, H, S, S)
    global_maps = [p[B:] for p in attn_layers]
    maps = jnp.stack(local_maps + global_maps, axis=0)     # (2L, B, H, S, S)
    maps = maps.transpose(1, 0, 2, 3, 4)                   # (B, 2L, H, S, S)
    return out, maps


# ----------------------------- parameter init ------------------------------ #

def init_params(key, cfg):
    D = cfg["origin_feature_dim"]
    I = cfg["intermediate_size"]
    O = cfg["hidden_size"]
    L = cfg["num_hidden_layers"]
    P = cfg["max_position_embeddings"]

    def dense(k, fin, fout):
        w = (0.02 * jax.random.normal(k, (fin, fout), jnp.float32))
        return w.astype(jnp.bfloat16), jnp.zeros((fout,), jnp.float32)

    keys = jax.random.split(key, 2 + L)
    params = {
        "pos_emb": 0.02 * jax.random.normal(keys[0], (P, D), jnp.float32),
        "emb_ln_g": jnp.ones((1, D), jnp.float32),
        "emb_ln_b": jnp.zeros((1, D), jnp.float32),
    }
    layers = []
    for li in range(L):
        lk = jax.random.split(keys[2 + li], 4)
        layer = {}
        layer["qkv_w"], layer["qkv_b"] = dense(lk[0], D, 3 * D)   # fused Q|K|V
        layer["ao_w"], layer["ao_b"] = dense(lk[1], D, D)
        layer["attn_ln_g"] = jnp.ones((1, D), jnp.float32)
        layer["attn_ln_b"] = jnp.zeros((1, D), jnp.float32)
        layer["i_w"], layer["i_b"] = dense(lk[2], D, I)
        layer["o_w"], layer["o_b"] = dense(lk[3], I, D)
        layer["out_ln_g"] = jnp.ones((1, D), jnp.float32)
        layer["out_ln_b"] = jnp.zeros((1, D), jnp.float32)
        layers.append(layer)
    params["layers"] = layers
    params["proj_w"], params["proj_b"] = dense(keys[1], D, O)
    return params


# ---------------------------------- main ----------------------------------- #

if __name__ == "__main__":
    cfg = dict(
        origin_feature_dim=32,     # encoder hidden size (input feature dim)
        hidden_size=16,            # output projection size
        num_attention_heads=4,
        num_hidden_layers=2,
        intermediate_size=64,
        max_position_embeddings=16,
        local_context_length=2,
        global_context_length=6,
    )

    key = jax.random.PRNGKey(0)
    pkey, xkey = jax.random.split(key)
    params = init_params(pkey, cfg)

    B, S, D = 2, 8, cfg["origin_feature_dim"]
    hidden_states = jax.random.normal(xkey, (B, S, D), jnp.float32)

    fwd = jax.jit(functools.partial(transformer_multi_scale_attention, cfg=cfg))
    out_hidden, attn_maps = fwd(params, hidden_states)
    jax.block_until_ready(out_hidden)
    jax.block_until_ready(attn_maps)

    assert out_hidden.shape == (B, S, cfg["hidden_size"])
    assert attn_maps.shape == (B, 2 * cfg["num_hidden_layers"],
                               cfg["num_attention_heads"], S, S)
    print("KERNEL_OK")
</pallas_src>

<mosaic_0001>
module attributes {stable_mosaic.version = 11 : i64} {
  func.func @_layernorm_kernel(%arg0: i32, %arg1: memref<16x32xbf16, #tpu.memory_space<vmem>>, %arg2: memref<1x32xf32, #tpu.memory_space<vmem>>, %arg3: memref<1x32xf32, #tpu.memory_space<vmem>>, %arg4: memref<16x32xbf16, #tpu.memory_space<vmem>>) attributes {dimension_semantics = [#tpu.dimension_semantics<parallel>], iteration_bounds = array<i64: 1>, scalar_prefetch = 0 : i64, scratch_operands = 0 : i64, tpu.core_type = #tpu.core_type<tc>, window_params = [{transform_indices = @transform_0, window_bounds = array<i64: 16, 32>}, {pipeline_mode = #tpu.pipeline_mode<synchronous>, transform_indices = @transform_1, window_bounds = array<i64: 1, 32>}, {pipeline_mode = #tpu.pipeline_mode<synchronous>, transform_indices = @transform_2, window_bounds = array<i64: 1, 32>}, {transform_indices = @transform_3, window_bounds = array<i64: 16, 32>}]} {
    %c0 = arith.constant 0 : index
    %c0_0 = arith.constant 0 : index
    %0 = vector.load %arg1[%c0, %c0_0] : memref<16x32xbf16, #tpu.memory_space<vmem>>, vector<16x32xbf16>
    %1 = arith.extf %0 : vector<16x32xbf16> to vector<16x32xf32>
    %cst = arith.constant dense<0.000000e+00> : vector<16xf32>
    %2 = vector.multi_reduction <add>, %1, %cst [1] : vector<16x32xf32> to vector<16xf32>
    %3 = vector.shape_cast %2 : vector<16xf32> to vector<16x1xf32>
    %cst_1 = arith.constant 3.200000e+01 : f32
    %4 = vector.broadcast %cst_1 : f32 to vector<16x1xf32>
    %5 = arith.divf %3, %4 : vector<16x1xf32>
    %6 = vector.broadcast %5 : vector<16x1xf32> to vector<16x32xf32>
    %7 = arith.subf %1, %6 : vector<16x32xf32>
    %8 = arith.mulf %7, %7 : vector<16x32xf32>
    %cst_2 = arith.constant dense<0.000000e+00> : vector<16xf32>
    %9 = vector.multi_reduction <add>, %8, %cst_2 [1] : vector<16x32xf32> to vector<16xf32>
    %10 = vector.shape_cast %9 : vector<16xf32> to vector<16x1xf32>
    %cst_3 = arith.constant 3.200000e+01 : f32
    %11 = vector.broadcast %cst_3 : f32 to vector<16x1xf32>
    %12 = arith.divf %10, %11 : vector<16x1xf32>
    %13 = vector.broadcast %5 : vector<16x1xf32> to vector<16x32xf32>
    %14 = arith.subf %1, %13 : vector<16x32xf32>
    %cst_4 = arith.constant 9.99999996E-13 : f32
    %15 = vector.broadcast %cst_4 : f32 to vector<16x1xf32>
    %16 = arith.addf %12, %15 : vector<16x1xf32>
    %17 = math.rsqrt %16 : vector<16x1xf32>
    %18 = vector.broadcast %17 : vector<16x1xf32> to vector<16x32xf32>
    %19 = arith.mulf %14, %18 : vector<16x32xf32>
    %c0_5 = arith.constant 0 : index
    %c0_6 = arith.constant 0 : index
    %20 = vector.load %arg2[%c0_5, %c0_6] : memref<1x32xf32, #tpu.memory_space<vmem>>, vector<1x32xf32>
    %21 = vector.broadcast %20 : vector<1x32xf32> to vector<16x32xf32>
    %22 = arith.mulf %19, %21 : vector<16x32xf32>
    %c0_7 = arith.constant 0 : index
    %c0_8 = arith.constant 0 : index
    %23 = vector.load %arg3[%c0_7, %c0_8] : memref<1x32xf32, #tpu.memory_space<vmem>>, vector<1x32xf32>
    %24 = vector.broadcast %23 : vector<1x32xf32> to vector<16x32xf32>
    %25 = arith.addf %22, %24 : vector<16x32xf32>
    %26 = arith.truncf %25 : vector<16x32xf32> to vector<16x32xbf16>
    %c0_9 = arith.constant 0 : index
    %c0_10 = arith.constant 0 : index
    %27 = vector.load %arg4[%c0_9, %c0_10] : memref<16x32xbf16, #tpu.memory_space<vmem>>, vector<16x32xbf16>
    tpu.vector_store %arg4[%c0_9, %c0_10], %26 {strides = array<i32>} : memref<16x32xbf16, #tpu.memory_space<vmem>>, vector<16x32xbf16>,
    return
  }
  func.func @transform_0(%arg0: i32) -> (i32, i32) {
    %c0_i32 = arith.constant 0 : i32
    %c0_i32_0 = arith.constant 0 : i32
    return %arg0, %c0_i32 : i32, i32
  }
  func.func @transform_1(%arg0: i32) -> (i32, i32) {
    %c0_i32 = arith.constant 0 : i32
    %c0_i32_0 = arith.constant 0 : i32
    %c0_i32_1 = arith.constant 0 : i32
    return %c0_i32, %c0_i32_0 : i32, i32
  }
  func.func @transform_2(%arg0: i32) -> (i32, i32) {
    %c0_i32 = arith.constant 0 : i32
    %c0_i32_0 = arith.constant 0 : i32
    %c0_i32_1 = arith.constant 0 : i32
    return %c0_i32, %c0_i32_0 : i32, i32
  }
  func.func @transform_3(%arg0: i32) -> (i32, i32) {
    %c0_i32 = arith.constant 0 : i32
    %c0_i32_0 = arith.constant 0 : i32
    return %arg0, %c0_i32 : i32, i32
  }
}

module attributes {stable_mosaic.version = 11 : i64} {
  func.func @_matmul_single_k_kernel(%arg0: i32, %arg1: i32, %arg2: memref<32x32xbf16, #tpu.memory_space<vmem>>, %arg3: memref<32x96xbf16, #tpu.memory_space<vmem>>, %arg4: memref<1x96xf32, #tpu.memory_space<vmem>>, %arg5: memref<32x96xbf16, #tpu.memory_space<vmem>>) attributes {dimension_semantics = [#tpu.dimension_semantics<parallel>, #tpu.dimension_semantics<parallel>], iteration_bounds = array<i64: 1, 1>, scalar_prefetch = 0 : i64, scratch_operands = 0 : i64, tpu.core_type = #tpu.core_type<tc>, window_params = [{transform_indices = @transform_0, window_bounds = array<i64: 32, 32>}, {transform_indices = @transform_1, window_bounds = array<i64: 32, 96>}, {transform_indices = @transform_2, window_bounds = array<i64: 1, 96>}, {transform_indices = @transform_3, window_bounds = array<i64: 32, 96>}]} {
    %c0 = arith.constant 0 : index
    %c0_0 = arith.constant 0 : index
    %0 = vector.load %arg2[%c0, %c0_0] : memref<32x32xbf16, #tpu.memory_space<vmem>>, vector<32x32xbf16>
    %c0_1 = arith.constant 0 : index
    %c0_2 = arith.constant 0 : index
    %1 = vector.load %arg3[%c0_1, %c0_2] : memref<32x96xbf16, #tpu.memory_space<vmem>>, vector<32x96xbf16>
    %cst = arith.constant dense<0.000000e+00> : vector<32x96xf32>
    %2 = tpu.matmul %0, %1, %cst {dimension_numbers = #tpu.dot_dimension_numbers<[1], [0], [0], [1], [0, 0, 1, 1], [], []>} : vector<32x32xbf16>, vector<32x96xbf16>, vector<32x96xf32> -> vector<32x96xf32>
    %c0_3 = arith.constant 0 : index
    %c0_4 = arith.constant 0 : index
    %3 = vector.load %arg4[%c0_3, %c0_4] : memref<1x96xf32, #tpu.memory_space<vmem>>, vector<1x96xf32>
    %4 = vector.broadcast %3 : vector<1x96xf32> to vector<32x96xf32>
    %5 = arith.addf %2, %4 : vector<32x96xf32>
    %6 = arith.truncf %5 : vector<32x96xf32> to vector<32x96xbf16>
    %c0_5 = arith.constant 0 : index
    %c0_6 = arith.constant 0 : index
    %7 = vector.load %arg5[%c0_5, %c0_6] : memref<32x96xbf16, #tpu.memory_space<vmem>>, vector<32x96xbf16>
    tpu.vector_store %arg5[%c0_5, %c0_6], %6 {strides = array<i32>} : memref<32x96xbf16, #tpu.memory_space<vmem>>, vector<32x96xbf16>,
    return
  }
  func.func @transform_0(%arg0: i32, %arg1: i32) -> (i32, i32) {
    %c0_i32 = arith.constant 0 : i32
    %c0_i32_0 = arith.constant 0 : i32
    return %arg0, %c0_i32 : i32, i32
  }
  func.func @transform_1(%arg0: i32, %arg1: i32) -> (i32, i32) {
    %c0_i32 = arith.constant 0 : i32
    %c0_i32_0 = arith.constant 0 : i32
    return %c0_i32, %arg1 : i32, i32
  }
  func.func @transform_2(%arg0: i32, %arg1: i32) -> (i32, i32) {
    %c0_i32 = arith.constant 0 : i32
    %c0_i32_0 = arith.constant 0 : i32
    return %c0_i32, %arg1 : i32, i32
  }
  func.func @transform_3(%arg0: i32, %arg1: i32) -> (i32, i32) {
    %c0_i32 = arith.constant 0 : i32
    return %arg0, %arg1 : i32, i32
  }
}

module attributes {stable_mosaic.version = 11 : i64} {
  func.func @_matmul_single_k_kernel(%arg0: i32, %arg1: i32, %arg2: memref<32x32xbf16, #tpu.memory_space<vmem>>, %arg3: memref<32x32xbf16, #tpu.memory_space<vmem>>, %arg4: memref<1x32xf32, #tpu.memory_space<vmem>>, %arg5: memref<32x32xbf16, #tpu.memory_space<vmem>>) attributes {dimension_semantics = [#tpu.dimension_semantics<parallel>, #tpu.dimension_semantics<parallel>], iteration_bounds = array<i64: 1, 1>, scalar_prefetch = 0 : i64, scratch_operands = 0 : i64, tpu.core_type = #tpu.core_type<tc>, window_params = [{transform_indices = @transform_0, window_bounds = array<i64: 32, 32>}, {transform_indices = @transform_1, window_bounds = array<i64: 32, 32>}, {transform_indices = @transform_2, window_bounds = array<i64: 1, 32>}, {transform_indices = @transform_3, window_bounds = array<i64: 32, 32>}]} {
    %c0 = arith.constant 0 : index
    %c0_0 = arith.constant 0 : index
    %0 = vector.load %arg2[%c0, %c0_0] : memref<32x32xbf16, #tpu.memory_space<vmem>>, vector<32x32xbf16>
    %c0_1 = arith.constant 0 : index
    %c0_2 = arith.constant 0 : index
    %1 = vector.load %arg3[%c0_1, %c0_2] : memref<32x32xbf16, #tpu.memory_space<vmem>>, vector<32x32xbf16>
    %cst = arith.constant dense<0.000000e+00> : vector<32x32xf32>
    %2 = tpu.matmul %0, %1, %cst {dimension_numbers = #tpu.dot_dimension_numbers<[1], [0], [0], [1], [0, 0, 1, 1], [], []>} : vector<32x32xbf16>, vector<32x32xbf16>, vector<32x32xf32> -> vector<32x32xf32>
    %c0_3 = arith.constant 0 : index
    %c0_4 = arith.constant 0 : index
    %3 = vector.load %arg4[%c0_3, %c0_4] : memref<1x32xf32, #tpu.memory_space<vmem>>, vector<1x32xf32>
    %4 = vector.broadcast %3 : vector<1x32xf32> to vector<32x32xf32>
    %5 = arith.addf %2, %4 : vector<32x32xf32>
    %6 = arith.truncf %5 : vector<32x32xf32> to vector<32x32xbf16>
    %c0_5 = arith.constant 0 : index
    %c0_6 = arith.constant 0 : index
    %7 = vector.load %arg5[%c0_5, %c0_6] : memref<32x32xbf16, #tpu.memory_space<vmem>>, vector<32x32xbf16>
    tpu.vector_store %arg5[%c0_5, %c0_6], %6 {strides = array<i32>} : memref<32x32xbf16, #tpu.memory_space<vmem>>, vector<32x32xbf16>,
    return
  }
  func.func @transform_0(%arg0: i32, %arg1: i32) -> (i32, i32) {
    %c0_i32 = arith.constant 0 : i32
    %c0_i32_0 = arith.constant 0 : i32
    return %arg0, %c0_i32 : i32, i32
  }
  func.func @transform_1(%arg0: i32, %arg1: i32) -> (i32, i32) {
    %c0_i32 = arith.constant 0 : i32
    %c0_i32_0 = arith.constant 0 : i32
    return %c0_i32, %arg1 : i32, i32
  }
  func.func @transform_2(%arg0: i32, %arg1: i32) -> (i32, i32) {
    %c0_i32 = arith.constant 0 : i32
    %c0_i32_0 = arith.constant 0 : i32
    return %c0_i32, %arg1 : i32, i32
  }
  func.func @transform_3(%arg0: i32, %arg1: i32) -> (i32, i32) {
    %c0_i32 = arith.constant 0 : i32
    return %arg0, %arg1 : i32, i32
  }
}

module attributes {stable_mosaic.version = 11 : i64} {
  func.func @kernel(%arg0: i32, %arg1: memref<8x96xbf16, #tpu.memory_space<vmem>>, %arg2: memref<8x32xbf16, #tpu.memory_space<vmem>>, %arg3: memref<1x4x8x8xf32, #tpu.memory_space<vmem>>) attributes {dimension_semantics = [#tpu.dimension_semantics<parallel>], iteration_bounds = array<i64: 4>, scalar_prefetch = 0 : i64, scratch_operands = 0 : i64, tpu.core_type = #tpu.core_type<tc>, window_params = [{transform_indices = @transform_0, window_bounds = array<i64: 8, 96>}, {transform_indices = @transform_1, window_bounds = array<i64: 8, 32>}, {transform_indices = @transform_2, window_bounds = array<i64: 1, 4, 8, 8>}]} {
    %c2_i32 = arith.constant 2 : i32
    %0 = arith.cmpi slt, %arg0, %c2_i32 : i32
    %c2_i32_0 = arith.constant 2 : i32
    %c6_i32 = arith.constant 6 : i32
    %1 = arith.select %0, %c2_i32_0, %c6_i32 : i32
    %2 = tpu.iota {dimensions = array<i32: 0>} : vector<8x8xi32>
    %3 = tpu.iota {dimensions = array<i32: 1>} : vector<8x8xi32>
    %4 = arith.subi %2, %3 : vector<8x8xi32>
    %5 = math.absi %4 : vector<8x8xi32>
    %6 = vector.broadcast %1 : i32 to vector<8x8xi32>
    %7 = arith.cmpi slt, %5, %6 : vector<8x8xi32>
    %cst = arith.constant 0.000000e+00 : f32
    %cst_1 = arith.constant -1.000000e+09 : f32
    %8 = vector.broadcast %cst : f32 to vector<8x8xf32>
    %9 = vector.broadcast %cst_1 : f32 to vector<8x8xf32>
    %10 = arith.select %7, %8, %9 : vector<8x8xi1>, vector<8x8xf32>
    %c0 = arith.constant 0 : index
    %c0_2 = arith.constant 0 : index
    %11 = vector.load %arg1[%c0, %c0_2] : memref<8x96xbf16, #tpu.memory_space<vmem>>, vector<8x96xbf16>
    %12 = vector.extract_strided_slice %11 {offsets = [0, 0], sizes = [8, 8], strides = [1, 1]} : vector<8x96xbf16> to vector<8x8xbf16>
    %13 = vector.extract_strided_slice %11 {offsets = [0, 32], sizes = [8, 8], strides = [1, 1]} : vector<8x96xbf16> to vector<8x8xbf16>
    %14 = vector.extract_strided_slice %11 {offsets = [0, 64], sizes = [8, 8], strides = [1, 1]} : vector<8x96xbf16> to vector<8x8xbf16>
    %cst_3 = arith.constant dense<0.000000e+00> : vector<8x8xf32>
    %15 = tpu.matmul %12, %13, %cst_3 {dimension_numbers = #tpu.dot_dimension_numbers<[1], [1], [0], [0], [0, 0, 1, 0], [], []>} : vector<8x8xbf16>, vector<8x8xbf16>, vector<8x8xf32> -> vector<8x8xf32>
    %cst_4 = arith.constant 0.353553385 : f32
    %16 = vector.broadcast %cst_4 : f32 to vector<8x8xf32>
    %17 = arith.mulf %15, %16 : vector<8x8xf32>
    %18 = arith.addf %17, %10 : vector<8x8xf32>
    %cst_5 = arith.constant dense<0xFF800000> : vector<8xf32>
    %19 = vector.multi_reduction <maximumf>, %18, %cst_5 [1] : vector<8x8xf32> to vector<8xf32>
    %20 = vector.shape_cast %19 : vector<8xf32> to vector<8x1xf32>
    %21 = vector.broadcast %20 : vector<8x1xf32> to vector<8x8xf32>
    %22 = arith.subf %18, %21 : vector<8x8xf32>
    %23 = math.exp %22 : vector<8x8xf32>
    %cst_6 = arith.constant dense<0.000000e+00> : vector<8xf32>
    %24 = vector.multi_reduction <add>, %23, %cst_6 [1] : vector<8x8xf32> to vector<8xf32>
    %25 = vector.shape_cast %24 : vector<8xf32> to vector<8x1xf32>
    %26 = tpu.reciprocal %25 {approx = true} : vector<8x1xf32> -> vector<8x1xf32>
    %27 = vector.broadcast %26 : vector<8x1xf32> to vector<8x8xf32>
    %28 = arith.mulf %23, %27 : vector<8x8xf32>
    %29 = arith.truncf %28 : vector<8x8xf32> to vector<8x8xbf16>
    %cst_7 = arith.constant dense<0.000000e+00> : vector<8x8xf32>
    %30 = tpu.matmul %29, %14, %cst_7 {dimension_numbers = #tpu.dot_dimension_numbers<[1], [0], [0], [1], [0, 0, 1, 1], [], []>} : vector<8x8xbf16>, vector<8x8xbf16>, vector<8x8xf32> -> vector<8x8xf32>
    %31 = vector.extract_strided_slice %11 {offsets = [0, 8], sizes = [8, 8], strides = [1, 1]} : vector<8x96xbf16> to vector<8x8xbf16>
    %32 = vector.extract_strided_slice %11 {offsets = [0, 40], sizes = [8, 8], strides = [1, 1]} : vector<8x96xbf16> to vector<8x8xbf16>
    %33 = vector.extract_strided_slice %11 {offsets = [0, 72], sizes = [8, 8], strides = [1, 1]} : vector<8x96xbf16> to vector<8x8xbf16>
    %cst_8 = arith.constant dense<0.000000e+00> : vector<8x8xf32>
    %34 = tpu.matmul %31, %32, %cst_8 {dimension_numbers = #tpu.dot_dimension_numbers<[1], [1], [0], [0], [0, 0, 1, 0], [], []>} : vector<8x8xbf16>, vector<8x8xbf16>, vector<8x8xf32> -> vector<8x8xf32>
    %cst_9 = arith.constant 0.353553385 : f32
    %35 = vector.broadcast %cst_9 : f32 to vector<8x8xf32>
    %36 = arith.mulf %34, %35 : vector<8x8xf32>
    %37 = arith.addf %36, %10 : vector<8x8xf32>
    %cst_10 = arith.constant dense<0xFF800000> : vector<8xf32>
    %38 = vector.multi_reduction <maximumf>, %37, %cst_10 [1] : vector<8x8xf32> to vector<8xf32>
    %39 = vector.shape_cast %38 : vector<8xf32> to vector<8x1xf32>
    %40 = vector.broadcast %39 : vector<8x1xf32> to vector<8x8xf32>
    %41 = arith.subf %37, %40 : vector<8x8xf32>
    %42 = math.exp %41 : vector<8x8xf32>
    %cst_11 = arith.constant dense<0.000000e+00> : vector<8xf32>
    %43 = vector.multi_reduction <add>, %42, %cst_11 [1] : vector<8x8xf32> to vector<8xf32>
    %44 = vector.shape_cast %43 : vector<8xf32> to vector<8x1xf32>
    %45 = tpu.reciprocal %44 {approx = true} : vector<8x1xf32> -> vector<8x1xf32>
    %46 = vector.broadcast %45 : vector<8x1xf32> to vector<8x8xf32>
    %47 = arith.mulf %42, %46 : vector<8x8xf32>
    %48 = arith.truncf %47 : vector<8x8xf32> to vector<8x8xbf16>
    %cst_12 = arith.constant dense<0.000000e+00> : vector<8x8xf32>
    %49 = tpu.matmul %48, %33, %cst_12 {dimension_numbers = #tpu.dot_dimension_numbers<[1], [0], [0], [1], [0, 0, 1, 1], [], []>} : vector<8x8xbf16>, vector<8x8xbf16>, vector<8x8xf32> -> vector<8x8xf32>
    %50 = vector.extract_strided_slice %11 {offsets = [0, 16], sizes = [8, 8], strides = [1, 1]} : vector<8x96xbf16> to vector<8x8xbf16>
    %51 = vector.extract_strided_slice %11 {offsets = [0, 48], sizes = [8, 8], strides = [1, 1]} : vector<8x96xbf16> to vector<8x8xbf16>
    %52 = vector.extract_strided_slice %11 {offsets = [0, 80], sizes = [8, 8], strides = [1, 1]} : vector<8x96xbf16> to vector<8x8xbf16>
    %cst_13 = arith.constant dense<0.000000e+00> : vector<8x8xf32>
    %53 = tpu.matmul %50, %51, %cst_13 {dimension_numbers = #tpu.dot_dimension_numbers<[1], [1], [0], [0], [0, 0, 1, 0], [], []>} : vector<8x8xbf16>, vector<8x8xbf16>, vector<8x8xf32> -> vector<8x8xf32>
    %cst_14 = arith.constant 0.353553385 : f32
    %54 = vector.broadcast %cst_14 : f32 to vector<8x8xf32>
    %55 = arith.mulf %53, %54 : vector<8x8xf32>
    %56 = arith.addf %55, %10 : vector<8x8xf32>
    %cst_15 = arith.constant dense<0xFF800000> : vector<8xf32>
    %57 = vector.multi_reduction <maximumf>, %56, %cst_15 [1] : vector<8x8xf32> to vector<8xf32>
    %58 = vector.shape_cast %57 : vector<8xf32> to vector<8x1xf32>
    %59 = vector.broadcast %58 : vector<8x1xf32> to vector<8x8xf32>
    %60 = arith.subf %56, %59 : vector<8x8xf32>
    %61 = math.exp %60 : vector<8x8xf32>
    %cst_16 = arith.constant dense<0.000000e+00> : vector<8xf32>
    %62 = vector.multi_reduction <add>, %61, %cst_16 [1] : vector<8x8xf32> to vector<8xf32>
    %63 = vector.shape_cast %62 : vector<8xf32> to vector<8x1xf32>
    %64 = tpu.reciprocal %63 {approx = true} : vector<8x1xf32> -> vector<8x1xf32>
    %65 = vector.broadcast %64 : vector<8x1xf32> to vector<8x8xf32>
    %66 = arith.mulf %61, %65 : vector<8x8xf32>
    %67 = arith.truncf %66 : vector<8x8xf32> to vector<8x8xbf16>
    %cst_17 = arith.constant dense<0.000000e+00> : vector<8x8xf32>
    %68 = tpu.matmul %67, %52, %cst_17 {dimension_numbers = #tpu.dot_dimension_numbers<[1], [0], [0], [1], [0, 0, 1, 1], [], []>} : vector<8x8xbf16>, vector<8x8xbf16>, vector<8x8xf32> -> vector<8x8xf32>
    %69 = vector.extract_strided_slice %11 {offsets = [0, 24], sizes = [8, 8], strides = [1, 1]} : vector<8x96xbf16> to vector<8x8xbf16>
    %70 = vector.extract_strided_slice %11 {offsets = [0, 56], sizes = [8, 8], strides = [1, 1]} : vector<8x96xbf16> to vector<8x8xbf16>
    %71 = vector.extract_strided_slice %11 {offsets = [0, 88], sizes = [8, 8], strides = [1, 1]} : vector<8x96xbf16> to vector<8x8xbf16>
    %cst_18 = arith.constant dense<0.000000e+00> : vector<8x8xf32>
    %72 = tpu.matmul %69, %70, %cst_18 {dimension_numbers = #tpu.dot_dimension_numbers<[1], [1], [0], [0], [0, 0, 1, 0], [], []>} : vector<8x8xbf16>, vector<8x8xbf16>, vector<8x8xf32> -> vector<8x8xf32>
    %cst_19 = arith.constant 0.353553385 : f32
    %73 = vector.broadcast %cst_19 : f32 to vector<8x8xf32>
    %74 = arith.mulf %72, %73 : vector<8x8xf32>
    %75 = arith.addf %74, %10 : vector<8x8xf32>
    %cst_20 = arith.constant dense<0xFF800000> : vector<8xf32>
    %76 = vector.multi_reduction <maximumf>, %75, %cst_20 [1] : vector<8x8xf32> to vector<8xf32>
    %77 = vector.shape_cast %76 : vector<8xf32> to vector<8x1xf32>
    %78 = vector.broadcast %77 : vector<8x1xf32> to vector<8x8xf32>
    %79 = arith.subf %75, %78 : vector<8x8xf32>
    %80 = math.exp %79 : vector<8x8xf32>
    %cst_21 = arith.constant dense<0.000000e+00> : vector<8xf32>
    %81 = vector.multi_reduction <add>, %80, %cst_21 [1] : vector<8x8xf32> to vector<8xf32>
    %82 = vector.shape_cast %81 : vector<8xf32> to vector<8x1xf32>
    %83 = tpu.reciprocal %82 {approx = true} : vector<8x1xf32> -> vector<8x1xf32>
    %84 = vector.broadcast %83 : vector<8x1xf32> to vector<8x8xf32>
    %85 = arith.mulf %80, %84 : vector<8x8xf32>
    %86 = arith.truncf %85 : vector<8x8xf32> to vector<8x8xbf16>
    %cst_22 = arith.constant dense<0.000000e+00> : vector<8x8xf32>
    %87 = tpu.matmul %86, %71, %cst_22 {dimension_numbers = #tpu.dot_dimension_numbers<[1], [0], [0], [1], [0, 0, 1, 1], [], []>} : vector<8x8xbf16>, vector<8x8xbf16>, vector<8x8xf32> -> vector<8x8xf32>
    %88 = tpu.concatenate %30, %49, %68, %87 in 1 : vector<8x8xf32>, vector<8x8xf32>, vector<8x8xf32>, vector<8x8xf32> -> vector<8x32xf32>
    %89 = arith.truncf %88 : vector<8x32xf32> to vector<8x32xbf16>
    %c0_23 = arith.constant 0 : index
    %c0_24 = arith.constant 0 : index
    %90 = vector.load %arg2[%c0_23, %c0_24] : memref<8x32xbf16, #tpu.memory_space<vmem>>, vector<8x32xbf16>
    tpu.vector_store %arg2[%c0_23, %c0_24], %89 {strides = array<i32>} : memref<8x32xbf16, #tpu.memory_space<vmem>>, vector<8x32xbf16>,
    %91 = vector.shape_cast %28 : vector<8x8xf32> to vector<1x8x8xf32>
    %92 = vector.shape_cast %47 : vector<8x8xf32> to vector<1x8x8xf32>
    %93 = vector.shape_cast %66 : vector<8x8xf32> to vector<1x8x8xf32>
    %94 = vector.shape_cast %85 : vector<8x8xf32> to vector<1x8x8xf32>
    %95 = tpu.concatenate %91, %92, %93, %94 in 0 : vector<1x8x8xf32>, vector<1x8x8xf32>, vector<1x8x8xf32>, vector<1x8x8xf32> -> vector<4x8x8xf32>
    %c0_25 = arith.constant 0 : index
    %c0_26 = arith.constant 0 : index
    %c0_27 = arith.constant 0 : index
    %c0_28 = arith.constant 0 : index
    %96 = vector.load %arg3[%c0_25, %c0_26, %c0_27, %c0_28] : memref<1x4x8x8xf32, #tpu.memory_space<vmem>>, vector<1x4x8x8xf32>
    %97 = vector.shape_cast %96 : vector<1x4x8x8xf32> to vector<4x8x8xf32>
    %98 = vector.shape_cast %95 : vector<4x8x8xf32> to vector<1x4x8x8xf32>
    tpu.vector_store %arg3[%c0_25, %c0_26, %c0_27, %c0_28], %98 {strides = array<i32>} : memref<1x4x8x8xf32, #tpu.memory_space<vmem>>, vector<1x4x8x8xf32>,
    return
  }
  func.func @transform_0(%arg0: i32) -> (i32, i32) {
    %c0_i32 = arith.constant 0 : i32
    %c0_i32_0 = arith.constant 0 : i32
    return %arg0, %c0_i32 : i32, i32
  }
  func.func @transform_1(%arg0: i32) -> (i32, i32) {
    %c0_i32 = arith.constant 0 : i32
    %c0_i32_0 = arith.constant 0 : i32
    return %arg0, %c0_i32 : i32, i32
  }
  func.func @transform_2(%arg0: i32) -> (i32, i32, i32, i32) {
    %c0_i32 = arith.constant 0 : i32
    %c0_i32_0 = arith.constant 0 : i32
    %c0_i32_1 = arith.constant 0 : i32
    %c0_i32_2 = arith.constant 0 : i32
    return %arg0, %c0_i32, %c0_i32_0, %c0_i32_1 : i32, i32, i32, i32
  }
}

module attributes {stable_mosaic.version = 11 : i64} {
  func.func @_add_layernorm_kernel(%arg0: i32, %arg1: memref<32x32xbf16, #tpu.memory_space<vmem>>, %arg2: memref<32x32xbf16, #tpu.memory_space<vmem>>, %arg3: memref<1x32xf32, #tpu.memory_space<vmem>>, %arg4: memref<1x32xf32, #tpu.memory_space<vmem>>, %arg5: memref<32x32xbf16, #tpu.memory_space<vmem>>) attributes {dimension_semantics = [#tpu.dimension_semantics<parallel>], iteration_bounds = array<i64: 1>, scalar_prefetch = 0 : i64, scratch_operands = 0 : i64, tpu.core_type = #tpu.core_type<tc>, window_params = [{transform_indices = @transform_0, window_bounds = array<i64: 32, 32>}, {transform_indices = @transform_1, window_bounds = array<i64: 32, 32>}, {pipeline_mode = #tpu.pipeline_mode<synchronous>, transform_indices = @transform_2, window_bounds = array<i64: 1, 32>}, {pipeline_mode = #tpu.pipeline_mode<synchronous>, transform_indices = @transform_3, window_bounds = array<i64: 1, 32>}, {transform_indices = @transform_4, window_bounds = array<i64: 32, 32>}]} {
    %c0 = arith.constant 0 : index
    %c0_0 = arith.constant 0 : index
    %0 = vector.load %arg1[%c0, %c0_0] : memref<32x32xbf16, #tpu.memory_space<vmem>>, vector<32x32xbf16>
    %1 = arith.extf %0 : vector<32x32xbf16> to vector<32x32xf32>
    %c0_1 = arith.constant 0 : index
    %c0_2 = arith.constant 0 : index
    %2 = vector.load %arg2[%c0_1, %c0_2] : memref<32x32xbf16, #tpu.memory_space<vmem>>, vector<32x32xbf16>
    %3 = arith.extf %2 : vector<32x32xbf16> to vector<32x32xf32>
    %4 = arith.addf %1, %3 : vector<32x32xf32>
    %cst = arith.constant dense<0.000000e+00> : vector<32xf32>
    %5 = vector.multi_reduction <add>, %4, %cst [1] : vector<32x32xf32> to vector<32xf32>
    %6 = vector.shape_cast %5 : vector<32xf32> to vector<32x1xf32>
    %cst_3 = arith.constant 3.200000e+01 : f32
    %7 = vector.broadcast %cst_3 : f32 to vector<32x1xf32>
    %8 = arith.divf %6, %7 : vector<32x1xf32>
    %9 = vector.broadcast %8 : vector<32x1xf32> to vector<32x32xf32>
    %10 = arith.subf %4, %9 : vector<32x32xf32>
    %11 = arith.mulf %10, %10 : vector<32x32xf32>
    %cst_4 = arith.constant dense<0.000000e+00> : vector<32xf32>
    %12 = vector.multi_reduction <add>, %11, %cst_4 [1] : vector<32x32xf32> to vector<32xf32>
    %13 = vector.shape_cast %12 : vector<32xf32> to vector<32x1xf32>
    %cst_5 = arith.constant 3.200000e+01 : f32
    %14 = vector.broadcast %cst_5 : f32 to vector<32x1xf32>
    %15 = arith.divf %13, %14 : vector<32x1xf32>
    %16 = vector.broadcast %8 : vector<32x1xf32> to vector<32x32xf32>
    %17 = arith.subf %4, %16 : vector<32x32xf32>
    %cst_6 = arith.constant 9.99999996E-13 : f32
    %18 = vector.broadcast %cst_6 : f32 to vector<32x1xf32>
    %19 = arith.addf %15, %18 : vector<32x1xf32>
    %20 = math.rsqrt %19 : vector<32x1xf32>
    %21 = vector.broadcast %20 : vector<32x1xf32> to vector<32x32xf32>
    %22 = arith.mulf %17, %21 : vector<32x32xf32>
    %c0_7 = arith.constant 0 : index
    %c0_8 = arith.constant 0 : index
    %23 = vector.load %arg3[%c0_7, %c0_8] : memref<1x32xf32, #tpu.memory_space<vmem>>, vector<1x32xf32>
    %24 = vector.broadcast %23 : vector<1x32xf32> to vector<32x32xf32>
    %25 = arith.mulf %22, %24 : vector<32x32xf32>
    %c0_9 = arith.constant 0 : index
    %c0_10 = arith.constant 0 : index
    %26 = vector.load %arg4[%c0_9, %c0_10] : memref<1x32xf32, #tpu.memory_space<vmem>>, vector<1x32xf32>
    %27 = vector.broadcast %26 : vector<1x32xf32> to vector<32x32xf32>
    %28 = arith.addf %25, %27 : vector<32x32xf32>
    %29 = arith.truncf %28 : vector<32x32xf32> to vector<32x32xbf16>
    %c0_11 = arith.constant 0 : index
    %c0_12 = arith.constant 0 : index
    %30 = vector.load %arg5[%c0_11, %c0_12] : memref<32x32xbf16, #tpu.memory_space<vmem>>, vector<32x32xbf16>
    tpu.vector_store %arg5[%c0_11, %c0_12], %29 {strides = array<i32>} : memref<32x32xbf16, #tpu.memory_space<vmem>>, vector<32x32xbf16>,
    return
  }
  func.func @transform_0(%arg0: i32) -> (i32, i32) {
    %c0_i32 = arith.constant 0 : i32
    %c0_i32_0 = arith.constant 0 : i32
    return %arg0, %c0_i32 : i32, i32
  }
  func.func @transform_1(%arg0: i32) -> (i32, i32) {
    %c0_i32 = arith.constant 0 : i32
    %c0_i32_0 = arith.constant 0 : i32
    return %arg0, %c0_i32 : i32, i32
  }
  func.func @transform_2(%arg0: i32) -> (i32, i32) {
    %c0_i32 = arith.constant 0 : i32
    %c0_i32_0 = arith.constant 0 : i32
    %c0_i32_1 = arith.constant 0 : i32
    return %c0_i32, %c0_i32_0 : i32, i32
  }
  func.func @transform_3(%arg0: i32) -> (i32, i32) {
    %c0_i32 = arith.constant 0 : i32
    %c0_i32_0 = arith.constant 0 : i32
    %c0_i32_1 = arith.constant 0 : i32
    return %c0_i32, %c0_i32_0 : i32, i32
  }
  func.func @transform_4(%arg0: i32) -> (i32, i32) {
    %c0_i32 = arith.constant 0 : i32
    %c0_i32_0 = arith.constant 0 : i32
    return %arg0, %c0_i32 : i32, i32
  }
}

module attributes {stable_mosaic.version = 11 : i64} {
  func.func @_matmul_single_k_kernel(%arg0: i32, %arg1: i32, %arg2: memref<32x32xbf16, #tpu.memory_space<vmem>>, %arg3: memref<32x64xbf16, #tpu.memory_space<vmem>>, %arg4: memref<1x64xf32, #tpu.memory_space<vmem>>, %arg5: memref<32x64xbf16, #tpu.memory_space<vmem>>) attributes {dimension_semantics = [#tpu.dimension_semantics<parallel>, #tpu.dimension_semantics<parallel>], iteration_bounds = array<i64: 1, 1>, scalar_prefetch = 0 : i64, scratch_operands = 0 : i64, tpu.core_type = #tpu.core_type<tc>, window_params = [{transform_indices = @transform_0, window_bounds = array<i64: 32, 32>}, {transform_indices = @transform_1, window_bounds = array<i64: 32, 64>}, {transform_indices = @transform_2, window_bounds = array<i64: 1, 64>}, {transform_indices = @transform_3, window_bounds = array<i64: 32, 64>}]} {
    %c0 = arith.constant 0 : index
    %c0_0 = arith.constant 0 : index
    %0 = vector.load %arg2[%c0, %c0_0] : memref<32x32xbf16, #tpu.memory_space<vmem>>, vector<32x32xbf16>
    %c0_1 = arith.constant 0 : index
    %c0_2 = arith.constant 0 : index
    %1 = vector.load %arg3[%c0_1, %c0_2] : memref<32x64xbf16, #tpu.memory_space<vmem>>, vector<32x64xbf16>
    %cst = arith.constant dense<0.000000e+00> : vector<32x64xf32>
    %2 = tpu.matmul %0, %1, %cst {dimension_numbers = #tpu.dot_dimension_numbers<[1], [0], [0], [1], [0, 0, 1, 1], [], []>} : vector<32x32xbf16>, vector<32x64xbf16>, vector<32x64xf32> -> vector<32x64xf32>
    %c0_3 = arith.constant 0 : index
    %c0_4 = arith.constant 0 : index
    %3 = vector.load %arg4[%c0_3, %c0_4] : memref<1x64xf32, #tpu.memory_space<vmem>>, vector<1x64xf32>
    %4 = vector.broadcast %3 : vector<1x64xf32> to vector<32x64xf32>
    %5 = arith.addf %2, %4 : vector<32x64xf32>
    %cst_5 = arith.constant 5.000000e-01 : f32
    %6 = vector.broadcast %cst_5 : f32 to vector<32x64xf32>
    %7 = arith.mulf %6, %5 : vector<32x64xf32>
    %cst_6 = arith.constant 4.471500e-02 : f32
    %8 = vector.broadcast %cst_6 : f32 to vector<32x64xf32>
    %9 = arith.mulf %8, %5 : vector<32x64xf32>
    %10 = arith.mulf %9, %5 : vector<32x64xf32>
    %11 = arith.mulf %10, %5 : vector<32x64xf32>
    %12 = arith.addf %5, %11 : vector<32x64xf32>
    %cst_7 = arith.constant 0.797884583 : f32
    %13 = vector.broadcast %cst_7 : f32 to vector<32x64xf32>
    %14 = arith.mulf %13, %12 : vector<32x64xf32>
    %15 = math.tanh %14 : vector<32x64xf32>
    %cst_8 = arith.constant 1.000000e+00 : f32
    %16 = vector.broadcast %cst_8 : f32 to vector<32x64xf32>
    %17 = arith.addf %16, %15 : vector<32x64xf32>
    %18 = arith.mulf %7, %17 : vector<32x64xf32>
    %19 = arith.truncf %18 : vector<32x64xf32> to vector<32x64xbf16>
    %c0_9 = arith.constant 0 : index
    %c0_10 = arith.constant 0 : index
    %20 = vector.load %arg5[%c0_9, %c0_10] : memref<32x64xbf16, #tpu.memory_space<vmem>>, vector<32x64xbf16>
    tpu.vector_store %arg5[%c0_9, %c0_10], %19 {strides = array<i32>} : memref<32x64xbf16, #tpu.memory_space<vmem>>, vector<32x64xbf16>,
    return
  }
  func.func @transform_0(%arg0: i32, %arg1: i32) -> (i32, i32) {
    %c0_i32 = arith.constant 0 : i32
    %c0_i32_0 = arith.constant 0 : i32
    return %arg0, %c0_i32 : i32, i32
  }
  func.func @transform_1(%arg0: i32, %arg1: i32) -> (i32, i32) {
    %c0_i32 = arith.constant 0 : i32
    %c0_i32_0 = arith.constant 0 : i32
    return %c0_i32, %arg1 : i32, i32
  }
  func.func @transform_2(%arg0: i32, %arg1: i32) -> (i32, i32) {
    %c0_i32 = arith.constant 0 : i32
    %c0_i32_0 = arith.constant 0 : i32
    return %c0_i32, %arg1 : i32, i32
  }
  func.func @transform_3(%arg0: i32, %arg1: i32) -> (i32, i32) {
    %c0_i32 = arith.constant 0 : i32
    return %arg0, %arg1 : i32, i32
  }
}

module attributes {stable_mosaic.version = 11 : i64} {
  func.func @_matmul_single_k_kernel(%arg0: i32, %arg1: i32, %arg2: memref<32x64xbf16, #tpu.memory_space<vmem>>, %arg3: memref<64x32xbf16, #tpu.memory_space<vmem>>, %arg4: memref<1x32xf32, #tpu.memory_space<vmem>>, %arg5: memref<32x32xbf16, #tpu.memory_space<vmem>>) attributes {dimension_semantics = [#tpu.dimension_semantics<parallel>, #tpu.dimension_semantics<parallel>], iteration_bounds = array<i64: 1, 1>, scalar_prefetch = 0 : i64, scratch_operands = 0 : i64, tpu.core_type = #tpu.core_type<tc>, window_params = [{transform_indices = @transform_0, window_bounds = array<i64: 32, 64>}, {transform_indices = @transform_1, window_bounds = array<i64: 64, 32>}, {transform_indices = @transform_2, window_bounds = array<i64: 1, 32>}, {transform_indices = @transform_3, window_bounds = array<i64: 32, 32>}]} {
    %c0 = arith.constant 0 : index
    %c0_0 = arith.constant 0 : index
    %0 = vector.load %arg2[%c0, %c0_0] : memref<32x64xbf16, #tpu.memory_space<vmem>>, vector<32x64xbf16>
    %c0_1 = arith.constant 0 : index
    %c0_2 = arith.constant 0 : index
    %1 = vector.load %arg3[%c0_1, %c0_2] : memref<64x32xbf16, #tpu.memory_space<vmem>>, vector<64x32xbf16>
    %cst = arith.constant dense<0.000000e+00> : vector<32x32xf32>
    %2 = tpu.matmul %0, %1, %cst {dimension_numbers = #tpu.dot_dimension_numbers<[1], [0], [0], [1], [0, 0, 1, 1], [], []>} : vector<32x64xbf16>, vector<64x32xbf16>, vector<32x32xf32> -> vector<32x32xf32>
    %c0_3 = arith.constant 0 : index
    %c0_4 = arith.constant 0 : index
    %3 = vector.load %arg4[%c0_3, %c0_4] : memref<1x32xf32, #tpu.memory_space<vmem>>, vector<1x32xf32>
    %4 = vector.broadcast %3 : vector<1x32xf32> to vector<32x32xf32>
    %5 = arith.addf %2, %4 : vector<32x32xf32>
    %6 = arith.truncf %5 : vector<32x32xf32> to vector<32x32xbf16>
    %c0_5 = arith.constant 0 : index
    %c0_6 = arith.constant 0 : index
    %7 = vector.load %arg5[%c0_5, %c0_6] : memref<32x32xbf16, #tpu.memory_space<vmem>>, vector<32x32xbf16>
    tpu.vector_store %arg5[%c0_5, %c0_6], %6 {strides = array<i32>} : memref<32x32xbf16, #tpu.memory_space<vmem>>, vector<32x32xbf16>,
    return
  }
  func.func @transform_0(%arg0: i32, %arg1: i32) -> (i32, i32) {
    %c0_i32 = arith.constant 0 : i32
    %c0_i32_0 = arith.constant 0 : i32
    return %arg0, %c0_i32 : i32, i32
  }
  func.func @transform_1(%arg0: i32, %arg1: i32) -> (i32, i32) {
    %c0_i32 = arith.constant 0 : i32
    %c0_i32_0 = arith.constant 0 : i32
    return %c0_i32, %arg1 : i32, i32
  }
  func.func @transform_2(%arg0: i32, %arg1: i32) -> (i32, i32) {
    %c0_i32 = arith.constant 0 : i32
    %c0_i32_0 = arith.constant 0 : i32
    return %c0_i32, %arg1 : i32, i32
  }
  func.func @transform_3(%arg0: i32, %arg1: i32) -> (i32, i32) {
    %c0_i32 = arith.constant 0 : i32
    return %arg0, %arg1 : i32, i32
  }
}

module attributes {stable_mosaic.version = 11 : i64} {
  func.func @_matmul_single_k_kernel(%arg0: i32, %arg1: i32, %arg2: memref<32x32xbf16, #tpu.memory_space<vmem>>, %arg3: memref<32x16xbf16, #tpu.memory_space<vmem>>, %arg4: memref<1x16xf32, #tpu.memory_space<vmem>>, %arg5: memref<32x16xf32, #tpu.memory_space<vmem>>) attributes {dimension_semantics = [#tpu.dimension_semantics<parallel>, #tpu.dimension_semantics<parallel>], iteration_bounds = array<i64: 1, 1>, scalar_prefetch = 0 : i64, scratch_operands = 0 : i64, tpu.core_type = #tpu.core_type<tc>, window_params = [{transform_indices = @transform_0, window_bounds = array<i64: 32, 32>}, {transform_indices = @transform_1, window_bounds = array<i64: 32, 16>}, {transform_indices = @transform_2, window_bounds = array<i64: 1, 16>}, {transform_indices = @transform_3, window_bounds = array<i64: 32, 16>}]} {
    %c0 = arith.constant 0 : index
    %c0_0 = arith.constant 0 : index
    %0 = vector.load %arg2[%c0, %c0_0] : memref<32x32xbf16, #tpu.memory_space<vmem>>, vector<32x32xbf16>
    %c0_1 = arith.constant 0 : index
    %c0_2 = arith.constant 0 : index
    %1 = vector.load %arg3[%c0_1, %c0_2] : memref<32x16xbf16, #tpu.memory_space<vmem>>, vector<32x16xbf16>
    %cst = arith.constant dense<0.000000e+00> : vector<32x16xf32>
    %2 = tpu.matmul %0, %1, %cst {dimension_numbers = #tpu.dot_dimension_numbers<[1], [0], [0], [1], [0, 0, 1, 1], [], []>} : vector<32x32xbf16>, vector<32x16xbf16>, vector<32x16xf32> -> vector<32x16xf32>
    %c0_3 = arith.constant 0 : index
    %c0_4 = arith.constant 0 : index
    %3 = vector.load %arg4[%c0_3, %c0_4] : memref<1x16xf32, #tpu.memory_space<vmem>>, vector<1x16xf32>
    %4 = vector.broadcast %3 : vector<1x16xf32> to vector<32x16xf32>
    %5 = arith.addf %2, %4 : vector<32x16xf32>
    %c0_5 = arith.constant 0 : index
    %c0_6 = arith.constant 0 : index
    %6 = vector.load %arg5[%c0_5, %c0_6] : memref<32x16xf32, #tpu.memory_space<vmem>>, vector<32x16xf32>
    tpu.vector_store %arg5[%c0_5, %c0_6], %5 {strides = array<i32>} : memref<32x16xf32, #tpu.memory_space<vmem>>, vector<32x16xf32>,
    return
  }
  func.func @transform_0(%arg0: i32, %arg1: i32) -> (i32, i32) {
    %c0_i32 = arith.constant 0 : i32
    %c0_i32_0 = arith.constant 0 : i32
    return %arg0, %c0_i32 : i32, i32
  }
  func.func @transform_1(%arg0: i32, %arg1: i32) -> (i32, i32) {
    %c0_i32 = arith.constant 0 : i32
    %c0_i32_0 = arith.constant 0 : i32
    return %c0_i32, %arg1 : i32, i32
  }
  func.func @transform_2(%arg0: i32, %arg1: i32) -> (i32, i32) {
    %c0_i32 = arith.constant 0 : i32
    %c0_i32_0 = arith.constant 0 : i32
    return %c0_i32, %arg1 : i32, i32
  }
  func.func @transform_3(%arg0: i32, %arg1: i32) -> (i32, i32) {
    %c0_i32 = arith.constant 0 : i32
    return %arg0, %arg1 : i32, i32
  }
}

module attributes {stable_mosaic.version = 11 : i64} {
  func.func @_add_sigmoid_kernel(%arg0: i32, %arg1: memref<16x16xf32, #tpu.memory_space<vmem>>, %arg2: memref<16x16xf32, #tpu.memory_space<vmem>>, %arg3: memref<16x16xf32, #tpu.memory_space<vmem>>) attributes {dimension_semantics = [#tpu.dimension_semantics<parallel>], iteration_bounds = array<i64: 1>, scalar_prefetch = 0 : i64, scratch_operands = 0 : i64, tpu.core_type = #tpu.core_type<tc>, window_params = [{transform_indices = @transform_0, window_bounds = array<i64: 16, 16>}, {transform_indices = @transform_1, window_bounds = array<i64: 16, 16>}, {transform_indices = @transform_2, window_bounds = array<i64: 16, 16>}]} {
    %c0 = arith.constant 0 : index
    %c0_0 = arith.constant 0 : index
    %0 = vector.load %arg1[%c0, %c0_0] : memref<16x16xf32, #tpu.memory_space<vmem>>, vector<16x16xf32>
    %c0_1 = arith.constant 0 : index
    %c0_2 = arith.constant 0 : index
    %1 = vector.load %arg2[%c0_1, %c0_2] : memref<16x16xf32, #tpu.memory_space<vmem>>, vector<16x16xf32>
    %2 = arith.addf %0, %1 : vector<16x16xf32>
    %3 = arith.negf %2 : vector<16x16xf32>
    %4 = math.exp %3 : vector<16x16xf32>
    %cst = arith.constant 1.000000e+00 : f32
    %5 = vector.broadcast %cst : f32 to vector<16x16xf32>
    %6 = arith.addf %5, %4 : vector<16x16xf32>
    %7 = arith.divf %5, %6 : vector<16x16xf32>
    %c0_3 = arith.constant 0 : index
    %c0_4 = arith.constant 0 : index
    %8 = vector.load %arg3[%c0_3, %c0_4] : memref<16x16xf32, #tpu.memory_space<vmem>>, vector<16x16xf32>
    tpu.vector_store %arg3[%c0_3, %c0_4], %7 {strides = array<i32>} : memref<16x16xf32, #tpu.memory_space<vmem>>, vector<16x16xf32>,
    return
  }
  func.func @transform_0(%arg0: i32) -> (i32, i32) {
    %c0_i32 = arith.constant 0 : i32
    %c0_i32_0 = arith.constant 0 : i32
    return %arg0, %c0_i32 : i32, i32
  }
  func.func @transform_1(%arg0: i32) -> (i32, i32) {
    %c0_i32 = arith.constant 0 : i32
    %c0_i32_0 = arith.constant 0 : i32
    return %arg0, %c0_i32 : i32, i32
  }
  func.func @transform_2(%arg0: i32) -> (i32, i32) {
    %c0_i32 = arith.constant 0 : i32
    %c0_i32_0 = arith.constant 0 : i32
    return %arg0, %c0_i32 : i32, i32
  }
}

</mosaic_0001>

<bundles_post_ra>
// kernel: transformer_multi_scale_attention.17
= control target key start
LH: loop header
LB: loop body
LE: loop exit
PB: predicated region body
PF: predicated region fallthrough
CT: control target
= control target key end

     0   :  { %vm18_vm0 = vcmask 261120   ;;  %v104_v5 = vmov 32.0   ;;  %vm84_vm6 = vcmask 257024   ;;  %s144_s0 = inlined_call_operand.vmem [shape: bf16[16,32], index: 0, kind: input, shape index: {}]   ;;  %s145_s1 = inlined_call_operand.vmem [shape: f32[1,32], index: 1, kind: input, shape index: {}]   ;;  %s146_s2 = inlined_call_operand.vmem [shape: f32[1,32], index: 2, kind: input, shape index: {}]   ;;  %s147_s3 = inlined_call_operand.vmem [shape: bf16[16,32], index: 3, kind: output, shape index: {}]  }
   0x1   :  { %v92_v0 = vld [vmem:[%s144_s0] sm:$0xff]   ;;  %98 = vrcp.f32 %v104_v5 }
   0x2   :  { %v93_v1 = vunpack.c.l.bf16 %v92_v0  ;;  %v94_v3 = vunpack.c.h.bf16 %v92_v0  ;;  %v96_v36 = vld [vmem:[%s145_s1] ss:$0 sm:$0xff] }
   0x3   :  { %v97_v39 = vld [vmem:[%s146_s2] ss:$0 sm:$0xff] }
   0x4   :  { %v19_v2 = vsel %vm18_vm0, %v93_v1, 0.0  ;;  %v22_v4 = vsel %vm18_vm0, %v94_v3, 0.0 }
   0x5   :  { %20 = vadd.xlane.f32.xlu0 %v19_v2 }
   0x7   :  { %v99_v6 = vpop.eup %98 }
   0x8   :  { %v26_v7 = vmul.f32 32.0, %v99_v6  ;;  %vm30_vm1 = vweird.f32 %v99_v6 }
   0xa   :  { %v27_v8 = vsub.f32 1.0, %v26_v7 }
   0xc   :  { %v28_v9 = vmul.f32 %v99_v6, %v27_v8 }
   0xd   :  { %23 = vadd.xlane.f32.xlu0 %v22_v4 }
   0xe   :  { %v29_v10 = vadd.f32 %v99_v6, %v28_v9 }
  0x10   :  { %v31_v11 = vsel %vm30_vm1, %v99_v6, %v29_v10 }
  0x78   :  { %v21_v12 = vpop.xlane.xlu0 %20 }
  0x79   :  { %v32_v13 = vmul.f32 %v31_v11, %v21_v12 }
  0x7b   :  { %v34_v14 = vsub.f32 %v93_v1, %v32_v13 }
  0x7d   :  { %v36_v15 = vmul.f32 %v34_v14, %v34_v14 }
  0x7f   :  { %v38_v16 = vsel %vm18_vm0, %v36_v15, 0.0 }
  0x80   :  { %39 = vadd.xlane.f32.xlu1 %v38_v16  ;;  %v24_v17 = vpop.xlane.xlu0 %23 }
  0x81   :  { %v33_v18 = vmul.f32 %v31_v11, %v24_v17 }
  0x83   :  { %v35_v19 = vsub.f32 %v94_v3, %v33_v18 }
  0x85   :  { %v37_v20 = vmul.f32 %v35_v19, %v35_v19 }
  0x87   :  { %v41_v21 = vsel %vm18_vm0, %v37_v20, 0.0 }
  0x88   :  { %42 = vadd.xlane.f32.xlu1 %v41_v21 }
  0xf3   :  { %v40_v22 = vpop.xlane.xlu1 %39 }
  0xf4   :  { %v44_v23 = vmul.f32 %v40_v22, %v31_v11 }
  0xf6   :  { %v46_v24 = vadd.f32 1e-12, %v44_v23 }
  0xf8   :  { %100 = vrsqrt.f32 %v46_v24  ;;  %vm54_vm3 = vweird.f32 %v46_v24 }
  0xfb   :  { %v43_v25 = vpop.xlane.xlu1 %42 }
  0xfc   :  { %v45_v26 = vmul.f32 %v43_v25, %v31_v11 }
  0xfe   :  { %v101_v27 = vpop.eup %100  ;;  %v47_v28 = vadd.f32 1e-12, %v45_v26 }
  0xff   :  { %v49_v29 = vmul.f32 %v101_v27, %v46_v24  ;;  %vm55_vm2 = vweird.f32 %v101_v27 }
 0x100   :  { %102 = vrsqrt.f32 %v47_v28  ;;  %vm56_vm4 = vmor %vm54_vm3, %vm55_vm2  ;;  %vm64_vm7 = vweird.f32 %v47_v28 }
 0x101   :  { %v50_v30 = vmul.f32 %v101_v27, %v49_v29 }
 0x103   :  { %v51_v31 = vmul.f32 0.5, %v50_v30 }
 0x105   :  { %v52_v32 = vsub.f32 1.5, %v51_v31 }
 0x106   :  { %v103_v33 = vpop.eup %102 }
 0x107   :  { %v53_v34 = vmul.f32 %v101_v27, %v52_v32  ;;  %v59_v35 = vmul.f32 %v103_v33, %v47_v28  ;;  %vm65_vm5 = vweird.f32 %v103_v33 }
 0x108   :  { %vm66_vm8 = vmor %vm64_vm7, %vm65_vm5 }
 0x109   :  { %v57_v37 = vsel %vm56_vm4, %v101_v27, %v53_v34  ;;  %v60_v38 = vmul.f32 %v103_v33, %v59_v35 }
 0x10a   :  { %v68_v40 = vmul.f32 %v57_v37, %v34_v14 }
 0x10b   :  { %v61_v41 = vmul.f32 0.5, %v60_v38 }
 0x10c   :  { %v74_v42 = vmul.f32 %v96_v36, %v68_v40 }
 0x10d   :  { %v62_v43 = vsub.f32 1.5, %v61_v41 }
 0x10e   :  { %v80_v44 = vadd.f32 %v97_v39, %v74_v42 }
 0x10f   :  { %v63_v45 = vmul.f32 %v103_v33, %v62_v43 }
 0x110   :  { %v82_v46 = vpack.c.bf16 %v80_v44, %v80_v44 }
 0x111   :  { %v67_v47 = vsel %vm66_vm8, %v103_v33, %v63_v45 }
 0x112   :  { %85 = vst.msk [vmem:[%s147_s3] sm:$0xf] %vm84_vm6, %v82_v46  ;;  %v69_v48 = vmul.f32 %v67_v47, %v35_v19 }
 0x114   :  { %v75_v49 = vmul.f32 %v96_v36, %v69_v48 }
 0x116   :  { %v81_v50 = vadd.f32 %v97_v39, %v75_v49 }
 0x118   :  { %v83_v51 = vpack.c.bf16 %v81_v50, %v81_v50 }
 0x11a   :  { %86 = vst.msk [vmem:[%s147_s3 + $0x4] sm:$0xf] %vm84_vm6, %v83_v51 }

// kernel: transformer_multi_scale_attention.18
= control target key start
LH: loop header
LB: loop body
LE: loop exit
PB: predicated region body
PF: predicated region fallthrough
CT: control target
= control target key end

     0   :  { %vm49_vm0 = vcmask 261120   ;;  %vm79_vm1 = vcmask 781312   ;;  %s160_s1 = inlined_call_operand.vmem [shape: bf16[32,96], index: 1, kind: input, shape index: {}]   ;;  %s161_s2 = inlined_call_operand.vmem [shape: f32[1,96], index: 2, kind: input, shape index: {}]   ;;  %s162_s0 = inlined_call_operand.vmem [shape: bf16[32,32], index: 0, kind: input, shape index: {}]   ;;  %s163_s3 = inlined_call_operand.vmem [shape: bf16[32,96], index: 3, kind: output, shape index: {}]  }
   0x1   :  { %v109_v0 = vld [vmem:[%s160_s1 + $0x8] sm:$0xff]  ;;  %v108_v1 = vld [vmem:[%s160_s1] sm:$0xff] }
   0x2   :  { %62 = vmatpush.bf16.msra.mxu0 %v109_v0  ;;  %110 = vmatpush.bf16.msra.mxu1 %v109_v0  ;;  %v106_v2 = vld [vmem:[%s162_s0] sm:$0xff]  ;;  %v107_v3 = vld [vmem:[%s162_s0 + $0x8] sm:$0xff] }
   0x3   :  { %v112_v4 = vld [vmem:[%s161_s2] ss:$0 sm:$0xff] }
   0x6   :  { %63 = vmatpush.bf16.msra.mxu0 %v108_v1  ;;  %111 = vmatpush.bf16.msra.mxu1 %v108_v1 }
   0x9   :  { %104 = vmatmul.msk.bf16.vlgmr.msra.gmra.mxu0 %vm49_vm0, %v106_v2  ;;  %105 = vmatmul.msk.bf16.vlgmr.msra.gmra.mxu1 %vm49_vm0, %v107_v3 }
  0x86   :  { %v65_v5 = vpop.f32.mrf.mxu0  ;;  %v70_v6 = vpop.f32.mrf.mxu1 }
  0x87   :  { %v66_v7 = vadd.f32 %v112_v4, %v65_v5  ;;  %v71_v8 = vadd.f32 %v112_v4, %v70_v6 }
  0x89   :  { %v75_v9 = vpack.c.bf16 %v66_v7, %v66_v7  ;;  %v77_v10 = vpack.c.bf16 %v71_v8, %v71_v8 }
  0x8b   :  { %80 = vst.msk [vmem:[%s163_s3] sm:$0xf] %vm79_vm1, %v75_v9 }
  0x8c   :  { %82 = vst.msk [vmem:[%s163_s3 + $0x8] sm:$0xf] %vm79_vm1, %v77_v10 }
  0x8e   :  { %v67_v11 = vpop.f32.mrf.mxu0  ;;  %v72_v12 = vpop.f32.mrf.mxu1 }
  0x8f   :  { %v68_v13 = vadd.f32 %v112_v4, %v67_v11  ;;  %v73_v14 = vadd.f32 %v112_v4, %v72_v12 }
  0x91   :  { %v76_v15 = vpack.c.bf16 %v68_v13, %v68_v13  ;;  %v78_v16 = vpack.c.bf16 %v73_v14, %v73_v14 }
  0x93   :  { %81 = vst.msk [vmem:[%s163_s3 + $0x4] sm:$0xf] %vm79_vm1, %v76_v15 }
  0x94   :  { %83 = vst.msk [vmem:[%s163_s3 + $0xc] sm:$0xf] %vm79_vm1, %v78_v16 }

// kernel: transformer_multi_scale_attention.20
= control target key start
LH: loop header
LB: loop body
LE: loop exit
PB: predicated region body
PF: predicated region fallthrough
CT: control target
= control target key end

     0   :  { %vm49_vm0 = vcmask 261120   ;;  %vm79_vm1 = vcmask 257024   ;;  %s160_s1 = inlined_call_operand.vmem [shape: bf16[32,32], index: 1, kind: input, shape index: {}]   ;;  %s161_s2 = inlined_call_operand.vmem [shape: f32[1,32], index: 2, kind: input, shape index: {}]   ;;  %s162_s0 = inlined_call_operand.vmem [shape: bf16[32,32], index: 0, kind: input, shape index: {}]   ;;  %s163_s3 = inlined_call_operand.vmem [shape: bf16[32,32], index: 3, kind: output, shape index: {}]  }
   0x1   :  { %v109_v0 = vld [vmem:[%s160_s1 + $0x8] sm:$0xff]  ;;  %v108_v1 = vld [vmem:[%s160_s1] sm:$0xff] }
   0x2   :  { %62 = vmatpush.bf16.msra.mxu0 %v109_v0  ;;  %110 = vmatpush.bf16.msra.mxu1 %v109_v0  ;;  %v106_v2 = vld [vmem:[%s162_s0] sm:$0xff]  ;;  %v107_v3 = vld [vmem:[%s162_s0 + $0x8] sm:$0xff] }
   0x3   :  { %v112_v4 = vld [vmem:[%s161_s2] ss:$0 sm:$0xff] }
   0x6   :  { %63 = vmatpush.bf16.msra.mxu0 %v108_v1  ;;  %111 = vmatpush.bf16.msra.mxu1 %v108_v1 }
   0x9   :  { %104 = vmatmul.msk.bf16.vlgmr.msra.gmra.mxu0 %vm49_vm0, %v106_v2  ;;  %105 = vmatmul.msk.bf16.vlgmr.msra.gmra.mxu1 %vm49_vm0, %v107_v3 }
  0x86   :  { %v65_v5 = vpop.f32.mrf.mxu0  ;;  %v70_v6 = vpop.f32.mrf.mxu1 }
  0x87   :  { %v66_v7 = vadd.f32 %v112_v4, %v65_v5  ;;  %v71_v8 = vadd.f32 %v112_v4, %v70_v6 }
  0x89   :  { %v75_v9 = vpack.c.bf16 %v66_v7, %v66_v7  ;;  %v77_v10 = vpack.c.bf16 %v71_v8, %v71_v8 }
  0x8b   :  { %80 = vst.msk [vmem:[%s163_s3] sm:$0xf] %vm79_vm1, %v75_v9 }
  0x8c   :  { %82 = vst.msk [vmem:[%s163_s3 + $0x8] sm:$0xf] %vm79_vm1, %v77_v10 }
  0x8e   :  { %v67_v11 = vpop.f32.mrf.mxu0  ;;  %v72_v12 = vpop.f32.mrf.mxu1 }
  0x8f   :  { %v68_v13 = vadd.f32 %v112_v4, %v67_v11  ;;  %v73_v14 = vadd.f32 %v112_v4, %v72_v12 }
  0x91   :  { %v76_v15 = vpack.c.bf16 %v68_v13, %v68_v13  ;;  %v78_v16 = vpack.c.bf16 %v73_v14, %v73_v14 }
  0x93   :  { %81 = vst.msk [vmem:[%s163_s3 + $0x4] sm:$0xf] %vm79_vm1, %v76_v15 }
  0x94   :  { %83 = vst.msk [vmem:[%s163_s3 + $0xc] sm:$0xf] %vm79_vm1, %v78_v16 }

// kernel: transformer_multi_scale_attention.19
= control target key start
LH: loop header
LB: loop body
LE: loop exit
PB: predicated region body
PF: predicated region fallthrough
CT: control target
= control target key end

     0   :  { %s609_s9 = smov 0   ;;  %s693_s0 = inlined_call_operand.vmem [shape: bf16[32,96], index: 0, kind: input, shape index: {}]   ;;  %s694_s1 = inlined_call_operand.vmem [shape: bf16[32,32], index: 1, kind: output, shape index: {0}]   ;;  %s695_s2 = inlined_call_operand.vmem [shape: f32[4,4,8,8], index: 2, kind: output, shape index: {1}]  }
   0x1 LB: > { %s615_s10 = sadd.s32 4294967295, %s577_s9   ;;  %p516_p0 = scmp.ge.s32.totalorder %s577_s9, 1  ;;  %s577_s9 = sphi %s609_s9, %s13_s9  }
   0x2   : > { %p114_p1 = scmp.lt.s32.totalorder %s577_s9, 5 }
   0x4   : > { %p115_p2 = pnand %p516_p0, %p114_p1 }
   0x5   : > { %p139_p3 = scmp.lt.s32.totalorder (!%p115_p2), %s615_s10, 3  ;;  %s579_s16 = smov (!%p115_p2), 96  }
   0x6   : > { %118 = sbr.rel (%p115_p2) target bundleno = 1202 (0x4b2), region = 24  ;;  %s580_s17 = smov (!%p115_p2), 88  }
   0x7   : > { %s581_s18 = smov (!%p115_p2), 120   ;;  %s582_s19 = smov (!%p115_p2), 64  }
   0x8   : > { %s583_s20 = smov (!%p115_p2), 80   ;;  %s584_s21 = smov (!%p115_p2), 72  }
   0x9   : > { %s585_s22 = smov (!%p115_p2), 112   ;;  %s586_s23 = smov (!%p115_p2), 104  }
   0xa   : > { %p153_p4 = scmp.lt.s32.totalorder (!%p115_p2), %s615_s10, 2  ;;  %s588_s29 = smov (!%p115_p2), 56  }
   0xb   : > { %s621_s11 = scalar_select %p139_p3, %s615_s10, 3  ;;  %vm172_vm0 = vcmask 64512   ;;  %v155_v7 = vlaneseq  ;;  %v587_v16 = vmov -1e+09   ;;  %vm211_vm3 = vcmask 1043456  }
   0xc   : > { %s154_s24 = scalar_select %p153_p4, 2, 6  ;;  %vm415_vm4 = vcmask 130048   ;;  %vm417_vm5 = vcmask 195584   ;;  %vm420_vm6 = vcmask 257024  }
   0xd   : > { %s517_s12 = sshll.u32 %s621_s11, 2  ;;  %v156_v8 = vshrl.u32 %v155_v7, 7  ;;  %v158_v9 = vand.u32 127, %v155_v7  ;;  %s531_s25 = sshll.u32 %s621_s11, 5 }
   0xe   : > { %s142_s15 = scalar_lea.vmem %s693_s0, %s517_s12  ;;  %v163_v14 = vstv %s154_s24  ;;  %s656_s28 = scalar_lea.vmem %s695_s2, %s531_s25 }
   0xf   : > { %v166_v0 = vld [vmem:[%s142_s15] sm:$0xf]  ;;  %v159_v11 = vsub.s32 %v156_v8, %v158_v9  ;;  %s589_s30 = smov 40   ;;  %s590_s3 = smov 48  }
  0x10   : > { %v168_v1 = vunpack.c.l.b16 %v166_v0  ;;  %s591_s4 = smov 8   ;;  %s592_s5 = smov 16  }
  0x11   : > { %v161_v12 = vsub.s32 0, %v159_v11  ;;  %vm160_vm1 = vcmp.lt.s32.totalorder %v159_v11, 0  ;;  %s593_s6 = smov 24   ;;  %s146_s10 = scalar_lea.vmem %s694_s1, %s517_s12 }
  0x12   : > { %v629_v2 = vpack.c.b16 %v168_v1, %v168_v1 }
  0x13   : > { %v162_v13 = vsel %vm160_vm1, %v161_v12, %v159_v11 }
  0x14   : > { %170 = vrot.lane.b32.xlu0 %v629_v2, %s579_s16  ;;  %230 = vrot.lane.b32.xlu1 %v629_v2, %s580_s17  ;;  %vm164_vm2 = vcmp.lt.s32.totalorder %v162_v13, %v163_v14 }
  0x15   : > { %228 = vrot.lane.b32.xlu2 %v629_v2, %s581_s18  ;;  %v165_v17 = vsel %vm164_vm2, 0.0, %v587_v16 }
  0x1d   : > { %206 = vrot.lane.b32.xlu2 %v629_v2, %s582_s19 }
  0x25   : > { %288 = vrot.lane.b32.xlu2 %v629_v2, %s583_s20 }
  0x2d   : > { %346 = vrot.lane.b32.xlu2 %v629_v2, %s584_s21 }
  0x35   : > { %286 = vrot.lane.b32.xlu2 %v629_v2, %s585_s22 }
  0x3d   : > { %344 = vrot.lane.b32.xlu2 %v629_v2, %s586_s23 }
  0x6f   : > { %v229_v10 = vpop.permute.xlu2 %228 }
  0x77   : > { %v207_v22 = vpop.permute.xlu2 %206 }
  0x78   : > { %v213_v27 = vsel %vm211_vm3, %v207_v22, 0 }
  0x79   : > { %222 = vmatpush.bf16.msra.mxu1 %v213_v27 }
  0x7f   : > { %v289_v23 = vpop.permute.xlu2 %288 }
  0x80   : > { %v294_v25 = vsel %vm172_vm0, %v289_v23, 0 }
  0x81   : > { %303 = vmatpush.bf16.xpose.msrb.mxu1 %v294_v25 }
  0x86   : > { %v171_v3 = vpop.permute.xlu0 %170  ;;  %v231_v5 = vpop.permute.xlu1 %230 }
  0x87   : > { %v177_v4 = vsel %vm172_vm0, %v171_v3, 0  ;;  %v236_v6 = vsel %vm172_vm0, %v231_v5, 0  ;;  %v347_v24 = vpop.permute.xlu2 %346 }
  0x88   : > { %186 = vmatpush.bf16.xpose.msra.mxu0 %v177_v4  ;;  %245 = vmatpush.bf16.xpose.msra.mxu2 %v236_v6  ;;  %v352_v26 = vsel %vm172_vm0, %v347_v24, 0 }
  0x8f   : > { %521 = vmatmul.msk.bf16.vlgmr.msra.gmra.mxu0 %vm172_vm0, %v166_v0  ;;  %523 = vmatmul.msk.bf16.vlgmr.msra.gmra.mxu2 %vm172_vm0, %v229_v10  ;;  %v287_v28 = vpop.permute.xlu2 %286 }
  0x90   : > { %361 = vmatpush.bf16.xpose.msrb.mxu0 %v352_v26 }
  0x97   : > { %v345_v31 = vpop.permute.xlu2 %344 }
  0x9f   : > { %527 = vmatmul.msk.bf16.vlgmr.msrb.gmra.mxu0 %vm172_vm0, %v345_v31 }
 0x10c   : > { %v188_v15 = vpop.f32.mrf.mxu0 }
 0x10d   : > { %v192_v18 = vmul.f32 0.35355338, %v188_v15 }
 0x10f   : > { %v193_v19 = vadd.f32 %v192_v18, %v165_v17 }
 0x111   : > { %v194_v20 = vsel %vm172_vm0, %v193_v19, -inf }
 0x112   : > { %195 = vmax.xlane.f32.xlu0 %v194_v20  ;;  %v247_v29 = vpop.f32.mrf.mxu2 }
 0x113   : > { %v251_v30 = vmul.f32 0.35355338, %v247_v29 }
 0x114   : > { %v190_v21 = vpop.f32.mrf.mxu0 }
 0x115   : > { %v252_v32 = vadd.f32 %v251_v30, %v165_v17 }
 0x117   : > { %v253_v34 = vsel %vm172_vm0, %v252_v32, -inf }
 0x118   : > { %254 = vmax.xlane.f32.xlu2 %v253_v34 }
 0x11a   : > { %v249_v37 = vpop.f32.mrf.mxu2 }
 0x11c   : > { %v363_v40 = vpop.f32.mrf.mxu0 }
 0x11d   : > { %v367_v41 = vmul.f32 0.35355338, %v363_v40 }
 0x11f   : > { %v368_v42 = vadd.f32 %v367_v41, %v165_v17 }
 0x121   : > { %v369_v44 = vsel %vm172_vm0, %v368_v42, -inf }
 0x124   : > { %v365_v45 = vpop.f32.mrf.mxu0 }
 0x185   : > { %v196_v33 = vpop.xlane.xlu0 %195 }
 0x186   : > { %v197_v35 = vsub.f32 %v193_v19, %v196_v33 }
 0x188   : > { %v198_v36 = vmul.f32 1.442695, %v197_v35 }
 0x18a   : > { %555 = vpow2.f32 %v198_v36 }
 0x18b   : > { %v255_v51 = vpop.xlane.xlu2 %254 }
 0x18c   : > { %v256_v52 = vsub.f32 %v252_v32, %v255_v51 }
 0x18e   : > { %v257_v53 = vmul.f32 1.442695, %v256_v52 }
 0x190   : > { %v556_v38 = vpop.eup %555 }
 0x191   : > { %v200_v39 = vsel %vm172_vm0, %v556_v38, 0.0 }
 0x192   : > { %201 = vadd.xlane.f32.xlu1 %v200_v39 }
 0x19a   : > { %370 = vmax.xlane.f32.xlu1 %v369_v44 }
 0x1b3   : > { %265 = vrot.lane.b32.xlu1 %v629_v2, %s588_s29 }
 0x1bb   : > { %381 = vrot.lane.b32.xlu1 %v629_v2, %s589_s30 }
 0x205   : > { %v202_v43 = vpop.xlane.xlu1 %201 }
 0x206   : > { %557 = vrcp.f32 %v202_v43 }
 0x207   : > { %559 = vpow2.f32 %v257_v53 }
 0x20c   : > { %v558_v46 = vpop.eup %557 }
 0x20d   : > { %v204_v47 = vmul.f32 %v558_v46, %v556_v38  ;;  %v371_v55 = vpop.xlane.xlu1 %370  ;;  %v560_v62 = vpop.eup %559 }
 0x20e   : > { %v372_v58 = vsub.f32 %v368_v42, %v371_v55  ;;  %v259_v63 = vsel %vm172_vm0, %v560_v62, 0.0 }
 0x20f   : > { %v205_v48 = vpack.c.bf16 %v204_v47, %v204_v47  ;;  %422 = vst.msk [vmem:[%s656_s28] sm:$0xff] %vm172_vm0, %v204_v47 }
 0x210   : > { %v373_v60 = vmul.f32 1.442695, %v372_v58 }
 0x211   : > { %522 = vmatmul.msk.bf16.vlgmr.msra.gmra.mxu1 %vm172_vm0, %v205_v48 }
 0x212   : > { %561 = vpow2.f32 %v373_v60 }
 0x218   : > { %v562_v0 = vpop.eup %561 }
 0x219   : > { %v375_v1 = vsel %vm172_vm0, %v562_v0, 0.0 }
 0x221   : > { %525 = vmatmul.msk.bf16.vlgmr.msrb.gmra.mxu1 %vm172_vm0, %v287_v28 }
 0x225   : > { %v266_v3 = vpop.permute.xlu1 %265 }
 0x226   : > { %v271_v4 = vsel %vm211_vm3, %v266_v3, 0 }
 0x227   : > { %280 = vmatpush.bf16.msra.mxu3 %v271_v4 }
 0x22d   : > { %v382_v5 = vpop.permute.xlu1 %381 }
 0x22e   : > { %v387_v6 = vsel %vm211_vm3, %v382_v5, 0 }
 0x22f   : > { %396 = vmatpush.bf16.msrb.mxu2 %v387_v6 }
 0x28e   : > { %v664_v49 = vpop.f32.mrf.mxu1 }
 0x296   : > { %v226_v50 = vpop.f32.mrf.mxu1 }
 0x29e   : > { %v305_v54 = vpop.f32.mrf.mxu1 }
 0x29f   : > { %v309_v56 = vmul.f32 0.35355338, %v305_v54 }
 0x2a1   : > { %v310_v57 = vadd.f32 %v309_v56, %v165_v17 }
 0x2a3   : > { %v311_v59 = vsel %vm172_vm0, %v310_v57, -inf }
 0x2a4   : > { %312 = vmax.xlane.f32.xlu0 %v311_v59 }
 0x2a6   : > { %v307_v61 = vpop.f32.mrf.mxu1 }
 0x2ac   : > { %260 = vadd.xlane.f32.xlu0 %v259_v63 }
 0x2b4   : > { %376 = vadd.xlane.f32.xlu0 %v375_v1 }
 0x317   : > { %v313_v7 = vpop.xlane.xlu0 %312 }
 0x318   : > { %v314_v8 = vsub.f32 %v310_v57, %v313_v7 }
 0x31a   : > { %v315_v9 = vmul.f32 1.442695, %v314_v8 }
 0x31c   : > { %563 = vpow2.f32 %v315_v9 }
 0x31f   : > { %v261_v10 = vpop.xlane.xlu0 %260 }
 0x320   : > { %565 = vrcp.f32 %v261_v10 }
 0x322   : > { %v564_v11 = vpop.eup %563 }
 0x323   : > { %v317_v12 = vsel %vm172_vm0, %v564_v11, 0.0 }
 0x324   : > { %318 = vadd.xlane.f32.xlu0 %v317_v12 }
 0x326   : > { %v566_v13 = vpop.eup %565 }
 0x327   : > { %v377_v14 = vpop.xlane.xlu0 %376  ;;  %v263_v15 = vmul.f32 %v566_v13, %v560_v62 }
 0x328   : > { %567 = vrcp.f32 %v377_v14 }
 0x329   : > { %v264_v16 = vpack.c.bf16 %v263_v15, %v263_v15  ;;  %423 = vst.msk [vmem:[%s656_s28 + $0x8] sm:$0xff] %vm172_vm0, %v263_v15 }
 0x32b   : > { %524 = vmatmul.msk.bf16.vlgmr.msra.gmra.mxu3 %vm172_vm0, %v264_v16 }
 0x32e   : > { %v568_v17 = vpop.eup %567 }
 0x32f   : > { %v379_v18 = vmul.f32 %v568_v17, %v562_v0 }
 0x331   : > { %425 = vst.msk [vmem:[%s656_s28 + $0x18] sm:$0xff] %vm172_vm0, %v379_v18  ;;  %v380_v19 = vpack.c.bf16 %v379_v18, %v379_v18 }
 0x333   : > { %528 = vmatmul.msk.bf16.vlgmr.msrb.gmra.mxu2 %vm172_vm0, %v380_v19 }
 0x338   : > { %323 = vrot.lane.b32.xlu0 %v629_v2, %s590_s3 }
 0x397   : > { %v319_v20 = vpop.xlane.xlu0 %318 }
 0x398   : > { %569 = vrcp.f32 %v319_v20 }
 0x39e   : > { %v570_v21 = vpop.eup %569 }
 0x39f   : > { %v321_v22 = vmul.f32 %v570_v21, %v564_v11 }
 0x3a1   : > { %424 = vst.msk [vmem:[%s656_s28 + $0x10] sm:$0xff] %vm172_vm0, %v321_v22  ;;  %v322_v25 = vpack.c.bf16 %v321_v22, %v321_v22 }
 0x3aa   : > { %v324_v23 = vpop.permute.xlu0 %323 }
 0x3ab   : > { %v329_v24 = vsel %vm211_vm3, %v324_v23, 0 }
 0x3ac   : > { %338 = vmatpush.bf16.msrb.mxu3 %v329_v24 }
 0x3ae   : > { %v282_v26 = vpop.f32.mrf.mxu3 }
 0x3af   : > { %526 = vmatmul.msk.bf16.vlgmr.msrb.gmra.mxu3 %vm172_vm0, %v322_v25  ;;  %403 = vrot.lane.b32.xlu2 %v282_v26, %s591_s4 }
 0x3b6   : > { %v284_v27 = vpop.f32.mrf.mxu3  ;;  %v398_v28 = vpop.f32.mrf.mxu2 }
 0x3be   : > { %v400_v2 = vpop.f32.mrf.mxu2 }
 0x409   : > { %v404_v32 = vpop.permute.xlu2 %403 }
 0x40a   : > { %v414_v33 = vsel %vm172_vm0, %v664_v49, %v404_v32 }
 0x432   : > { %v340_v29 = vpop.f32.mrf.mxu3 }
 0x433   : > { %407 = vrot.lane.b32.xlu1 %v340_v29, %s592_s5 }
 0x43a   : > { %v342_v30 = vpop.f32.mrf.mxu3 }
 0x43b   : > { %411 = vrot.lane.b32.xlu1 %v398_v28, %s593_s6 }
 0x4a5   : > { %v408_v31 = vpop.permute.xlu1 %407 }
 0x4a6   : > { %v416_v34 = vsel %vm415_vm4, %v414_v33, %v408_v31 }
 0x4ad   : > { %v412_v35 = vpop.permute.xlu1 %411 }
 0x4ae   : > { %v418_v36 = vsel %vm417_vm5, %v416_v34, %v412_v35 }
 0x4af   : > { %v419_v37 = vpack.c.bf16 %v418_v36, %v418_v36 }
 0x4b1   : > { %421 = vst.msk [vmem:[%s146_s10] sm:$0xf] %vm420_vm6, %v419_v37 }
 0x4b2 PF: > { %s13_s9 = sadd.s32 1, %s577_s9  }
 0x4b3   : > { %p10_p5 = scmp.ge.s32.totalorder %s13_s9, 6  }
 0x4b5   :  { %12 = sbr.rel (!%p10_p5) target bundleno = 1 (0x1), region = 66 }

// kernel: transformer_multi_scale_attention.22
= control target key start
LH: loop header
LB: loop body
LE: loop exit
PB: predicated region body
PF: predicated region fallthrough
CT: control target
= control target key end

     0   :  { %vm49_vm0 = vcmask 261120   ;;  %vm115_vm1 = vcmask 519168   ;;  %s208_s1 = inlined_call_operand.vmem [shape: bf16[32,64], index: 1, kind: input, shape index: {}]   ;;  %s209_s2 = inlined_call_operand.vmem [shape: f32[1,64], index: 2, kind: input, shape index: {}]   ;;  %s210_s0 = inlined_call_operand.vmem [shape: bf16[32,32], index: 0, kind: input, shape index: {}]   ;;  %s211_s3 = inlined_call_operand.vmem [shape: bf16[32,64], index: 3, kind: output, shape index: {}]  }
   0x1   :  { %v145_v0 = vld [vmem:[%s208_s1 + $0x8] sm:$0xff]  ;;  %v144_v1 = vld [vmem:[%s208_s1] sm:$0xff] }
   0x2   :  { %62 = vmatpush.bf16.msra.mxu0 %v145_v0  ;;  %146 = vmatpush.bf16.msra.mxu1 %v145_v0  ;;  %v142_v2 = vld [vmem:[%s210_s0] sm:$0xff]  ;;  %v143_v3 = vld [vmem:[%s210_s0 + $0x8] sm:$0xff] }
   0x3   :  { %v148_v4 = vld [vmem:[%s209_s2] ss:$0 sm:$0xff] }
   0x6   :  { %63 = vmatpush.bf16.msra.mxu0 %v144_v1  ;;  %147 = vmatpush.bf16.msra.mxu1 %v144_v1 }
   0x9   :  { %140 = vmatmul.msk.bf16.vlgmr.msra.gmra.mxu0 %vm49_vm0, %v142_v2  ;;  %141 = vmatmul.msk.bf16.vlgmr.msra.gmra.mxu1 %vm49_vm0, %v143_v3 }
  0x86   :  { %v65_v5 = vpop.f32.mrf.mxu0  ;;  %v70_v6 = vpop.f32.mrf.mxu1 }
  0x87   :  { %v66_v7 = vadd.f32 %v148_v4, %v65_v5  ;;  %v71_v8 = vadd.f32 %v148_v4, %v70_v6 }
  0x89   :  { %v79_v9 = vmul.f32 0.044715, %v66_v7  ;;  %v81_v10 = vmul.f32 0.044715, %v71_v8  ;;  %v75_v33 = vmul.f32 0.5, %v66_v7  ;;  %v77_v37 = vmul.f32 0.5, %v71_v8 }
  0x8b   :  { %v83_v11 = vmul.f32 %v79_v9, %v66_v7  ;;  %v85_v12 = vmul.f32 %v81_v10, %v71_v8 }
  0x8d   :  { %v87_v13 = vmul.f32 %v83_v11, %v66_v7  ;;  %v89_v14 = vmul.f32 %v85_v12, %v71_v8 }
  0x8e   :  { %v67_v15 = vpop.f32.mrf.mxu0  ;;  %v72_v16 = vpop.f32.mrf.mxu1 }
  0x8f   :  { %v91_v17 = vadd.f32 %v87_v13, %v66_v7  ;;  %v93_v18 = vadd.f32 %v89_v14, %v71_v8  ;;  %v68_v19 = vadd.f32 %v148_v4, %v67_v15  ;;  %v73_v20 = vadd.f32 %v148_v4, %v72_v16 }
  0x91   :  { %v95_v21 = vmul.f32 0.7978846, %v91_v17  ;;  %v97_v22 = vmul.f32 0.7978846, %v93_v18  ;;  %v80_v23 = vmul.f32 0.044715, %v68_v19 }
  0x92   :  { %v82_v24 = vmul.f32 0.044715, %v73_v20  ;;  %v76_v45 = vmul.f32 0.5, %v68_v19  ;;  %v78_v47 = vmul.f32 0.5, %v73_v20 }
  0x93   :  { %149 = vtanh.f32 %v95_v21  ;;  %v84_v25 = vmul.f32 %v80_v23, %v68_v19 }
  0x94   :  { %151 = vtanh.f32 %v97_v22  ;;  %v86_v26 = vmul.f32 %v82_v24, %v73_v20 }
  0x95   :  { %v88_v27 = vmul.f32 %v84_v25, %v68_v19 }
  0x96   :  { %v90_v28 = vmul.f32 %v86_v26, %v73_v20 }
  0x97   :  { %v92_v29 = vadd.f32 %v88_v27, %v68_v19 }
  0x98   :  { %v94_v30 = vadd.f32 %v90_v28, %v73_v20 }
  0x99   :  { %v150_v31 = vpop.eup %149  ;;  %v96_v35 = vmul.f32 0.7978846, %v92_v29 }
  0x9a   :  { %v152_v32 = vpop.eup %151  ;;  %v103_v34 = vadd.f32 1.0, %v150_v31  ;;  %v98_v36 = vmul.f32 0.7978846, %v94_v30 }
  0x9b   :  { %v105_v38 = vadd.f32 1.0, %v152_v32  ;;  %153 = vtanh.f32 %v96_v35 }
  0x9c   :  { %v107_v39 = vmul.f32 %v103_v34, %v75_v33  ;;  %155 = vtanh.f32 %v98_v36 }
  0x9d   :  { %v109_v40 = vmul.f32 %v105_v38, %v77_v37 }
  0x9e   :  { %v111_v41 = vpack.c.bf16 %v107_v39, %v107_v39 }
  0x9f   :  { %v113_v42 = vpack.c.bf16 %v109_v40, %v109_v40 }
  0xa0   :  { %116 = vst.msk [vmem:[%s211_s3] sm:$0xf] %vm115_vm1, %v111_v41 }
  0xa1   :  { %118 = vst.msk [vmem:[%s211_s3 + $0x8] sm:$0xf] %vm115_vm1, %v113_v42  ;;  %v154_v43 = vpop.eup %153 }
  0xa2   :  { %v156_v44 = vpop.eup %155  ;;  %v104_v46 = vadd.f32 1.0, %v154_v43 }
  0xa3   :  { %v106_v48 = vadd.f32 1.0, %v156_v44 }
  0xa4   :  { %v108_v49 = vmul.f32 %v104_v46, %v76_v45 }
  0xa5   :  { %v110_v50 = vmul.f32 %v106_v48, %v78_v47 }
  0xa6   :  { %v112_v51 = vpack.c.bf16 %v108_v49, %v108_v49 }
  0xa7   :  { %v114_v52 = vpack.c.bf16 %v110_v50, %v110_v50 }
  0xa8   :  { %117 = vst.msk [vmem:[%s211_s3 + $0x4] sm:$0xf] %vm115_vm1, %v112_v51 }
  0xa9   :  { %119 = vst.msk [vmem:[%s211_s3 + $0xc] sm:$0xf] %vm115_vm1, %v114_v52 }

// kernel: transformer_multi_scale_attention.21
= control target key start
LH: loop header
LB: loop body
LE: loop exit
PB: predicated region body
PF: predicated region fallthrough
CT: control target
= control target key end

     0   :  { %vm37_vm0 = vcmask 261120   ;;  %v193_v20 = vmov 32.0   ;;  %vm153_vm10 = vcmask 257024   ;;  %s281_s0 = inlined_call_operand.vmem [shape: bf16[32,32], index: 0, kind: input, shape index: {}]   ;;  %s282_s1 = inlined_call_operand.vmem [shape: bf16[32,32], index: 1, kind: input, shape index: {}]   ;;  %s283_s2 = inlined_call_operand.vmem [shape: f32[1,32], index: 2, kind: input, shape index: {}]   ;;  %s284_s3 = inlined_call_operand.vmem [shape: f32[1,32], index: 3, kind: input, shape index: {}]   ;;  %s285_s4 = inlined_call_operand.vmem [shape: bf16[32,32], index: 4, kind: output, shape index: {}]  }
   0x1   :  { %v178_v0 = vld [vmem:[%s281_s0 + $0x8] sm:$0xff]   ;;  %v163_v2 = vld [vmem:[%s281_s0] sm:$0xff]   ;;  %183 = vrcp.f32 %v193_v20 }
   0x2   :  { %v179_v1 = vld [vmem:[%s282_s1 + $0x8] sm:$0xff]   ;;  %v168_v3 = vunpack.c.l.bf16 %v178_v0  ;;  %v164_v5 = vunpack.c.l.bf16 %v163_v2  ;;  %v171_v6 = vld [vmem:[%s282_s1] sm:$0xff]   ;;  %v169_v9 = vunpack.c.h.bf16 %v178_v0  ;;  %v165_v12 = vunpack.c.h.bf16 %v163_v2 }
   0x3   :  { %v176_v4 = vunpack.c.l.bf16 %v179_v1  ;;  %v172_v7 = vunpack.c.l.bf16 %v171_v6  ;;  %v177_v10 = vunpack.c.h.bf16 %v179_v1  ;;  %v173_v13 = vunpack.c.h.bf16 %v171_v6 }
   0x5   :  { %v35_v8 = vadd.f32 %v176_v4, %v168_v3  ;;  %v33_v11 = vadd.f32 %v172_v7, %v164_v5  ;;  %v36_v16 = vadd.f32 %v177_v10, %v169_v9  ;;  %v34_v17 = vadd.f32 %v173_v13, %v165_v12  ;;  %v181_v9 = vld [vmem:[%s283_s2] ss:$0 sm:$0xff] }
   0x7   :  { %v44_v14 = vsel %vm37_vm0, %v35_v8, 0.0  ;;  %v38_v15 = vsel %vm37_vm0, %v33_v11, 0.0  ;;  %v47_v18 = vsel %vm37_vm0, %v36_v16, 0.0  ;;  %v41_v19 = vsel %vm37_vm0, %v34_v17, 0.0  ;;  %v184_v21 = vpop.eup %183 }
   0x8   :  { %45 = vadd.xlane.f32.xlu1 %v44_v14  ;;  %39 = vadd.xlane.f32.xlu0 %v38_v15  ;;  %v51_v22 = vmul.f32 32.0, %v184_v21  ;;  %vm55_vm1 = vweird.f32 %v184_v21  ;;  %v182_v14 = vld [vmem:[%s284_s3] ss:$0 sm:$0xff] }
   0xa   :  { %v52_v23 = vsub.f32 1.0, %v51_v22 }
   0xc   :  { %v53_v24 = vmul.f32 %v184_v21, %v52_v23 }
   0xe   :  { %v54_v25 = vadd.f32 %v184_v21, %v53_v24 }
  0x10   :  { %48 = vadd.xlane.f32.xlu1 %v47_v18  ;;  %42 = vadd.xlane.f32.xlu0 %v41_v19  ;;  %v56_v26 = vsel %vm55_vm1, %v184_v21, %v54_v25 }
  0x7b   :  { %v46_v27 = vpop.xlane.xlu1 %45  ;;  %v40_v29 = vpop.xlane.xlu0 %39 }
  0x7c   :  { %v59_v28 = vmul.f32 %v56_v26, %v46_v27  ;;  %v57_v30 = vmul.f32 %v56_v26, %v40_v29 }
  0x7e   :  { %v235_v31 = vsub.f32 %v35_v8, %v59_v28  ;;  %v237_v32 = vsub.f32 %v33_v11, %v57_v30 }
  0x80   :  { %v67_v33 = vmul.f32 %v235_v31, %v235_v31  ;;  %v65_v34 = vmul.f32 %v237_v32, %v237_v32 }
  0x82   :  { %v75_v35 = vsel %vm37_vm0, %v67_v33, 0.0  ;;  %v69_v37 = vsel %vm37_vm0, %v65_v34, 0.0 }
  0x83   :  { %v49_v36 = vpop.xlane.xlu1 %48  ;;  %76 = vadd.xlane.f32.xlu0 %v75_v35  ;;  %70 = vadd.xlane.f32.xlu2 %v69_v37  ;;  %v43_v39 = vpop.xlane.xlu0 %42 }
  0x84   :  { %v60_v38 = vmul.f32 %v56_v26, %v49_v36  ;;  %v58_v40 = vmul.f32 %v56_v26, %v43_v39 }
  0x86   :  { %v245_v41 = vsub.f32 %v36_v16, %v60_v38  ;;  %v247_v42 = vsub.f32 %v34_v17, %v58_v40 }
  0x88   :  { %v68_v43 = vmul.f32 %v245_v41, %v245_v41  ;;  %v66_v44 = vmul.f32 %v247_v42, %v247_v42 }
  0x8a   :  { %v78_v45 = vsel %vm37_vm0, %v68_v43, 0.0  ;;  %v72_v46 = vsel %vm37_vm0, %v66_v44, 0.0 }
  0x8b   :  { %79 = vadd.xlane.f32.xlu1 %v78_v45  ;;  %73 = vadd.xlane.f32.xlu2 %v72_v46 }
  0xf6   :  { %v77_v47 = vpop.xlane.xlu0 %76  ;;  %v71_v48 = vpop.xlane.xlu2 %70 }
  0xf7   :  { %v83_v49 = vmul.f32 %v77_v47, %v56_v26  ;;  %v81_v50 = vmul.f32 %v71_v48, %v56_v26 }
  0xf9   :  { %v87_v51 = vadd.f32 1e-12, %v83_v49  ;;  %v85_v52 = vadd.f32 1e-12, %v81_v50 }
  0xfb   :  { %185 = vrsqrt.f32 %v87_v51  ;;  %vm115_vm4 = vweird.f32 %v87_v51  ;;  %vm95_vm5 = vweird.f32 %v85_v52 }
  0xfc   :  { %187 = vrsqrt.f32 %v85_v52 }
  0xfe   :  { %v80_v53 = vpop.xlane.xlu1 %79  ;;  %v74_v55 = vpop.xlane.xlu2 %73 }
  0xff   :  { %v84_v54 = vmul.f32 %v80_v53, %v56_v26  ;;  %v82_v56 = vmul.f32 %v74_v55, %v56_v26 }
 0x101   :  { %v186_v57 = vpop.eup %185  ;;  %v88_v58 = vadd.f32 1e-12, %v84_v54  ;;  %v86_v61 = vadd.f32 1e-12, %v82_v56 }
 0x102   :  { %v188_v59 = vpop.eup %187  ;;  %v110_v60 = vmul.f32 %v186_v57, %v87_v51  ;;  %vm116_vm2 = vweird.f32 %v186_v57 }
 0x103   :  { %v90_v62 = vmul.f32 %v188_v59, %v85_v52  ;;  %189 = vrsqrt.f32 %v88_v58  ;;  %vm96_vm3 = vweird.f32 %v188_v59  ;;  %vm117_vm6 = vmor %vm115_vm4, %vm116_vm2  ;;  %vm125_vm11 = vweird.f32 %v88_v58 }
 0x104   :  { %v111_v63 = vmul.f32 %v186_v57, %v110_v60  ;;  %191 = vrsqrt.f32 %v86_v61  ;;  %vm97_vm7 = vmor %vm95_vm5, %vm96_vm3  ;;  %vm105_vm13 = vweird.f32 %v86_v61 }
 0x105   :  { %v91_v0 = vmul.f32 %v188_v59, %v90_v62 }
 0x106   :  { %v112_v1 = vmul.f32 0.5, %v111_v63 }
 0x107   :  { %v92_v2 = vmul.f32 0.5, %v91_v0 }
 0x108   :  { %v113_v3 = vsub.f32 1.5, %v112_v1 }
 0x109   :  { %v190_v4 = vpop.eup %189  ;;  %v93_v5 = vsub.f32 1.5, %v92_v2 }
 0x10a   :  { %v192_v6 = vpop.eup %191  ;;  %v114_v7 = vmul.f32 %v186_v57, %v113_v3  ;;  %v120_v8 = vmul.f32 %v190_v4, %v88_v58  ;;  %vm126_vm8 = vweird.f32 %v190_v4 }
 0x10b   :  { %v94_v10 = vmul.f32 %v188_v59, %v93_v5  ;;  %v100_v11 = vmul.f32 %v192_v6, %v86_v61  ;;  %vm106_vm9 = vweird.f32 %v192_v6  ;;  %vm127_vm12 = vmor %vm125_vm11, %vm126_vm8 }
 0x10c   :  { %v118_v12 = vsel %vm117_vm6, %v186_v57, %v114_v7  ;;  %v121_v13 = vmul.f32 %v190_v4, %v120_v8  ;;  %vm107_vm14 = vmor %vm105_vm13, %vm106_vm9 }
 0x10d   :  { %v98_v15 = vsel %vm97_vm7, %v188_v59, %v94_v10  ;;  %v131_v16 = vmul.f32 %v118_v12, %v235_v31  ;;  %v101_v17 = vmul.f32 %v192_v6, %v100_v11 }
 0x10e   :  { %v129_v18 = vmul.f32 %v98_v15, %v237_v32  ;;  %v122_v19 = vmul.f32 0.5, %v121_v13 }
 0x10f   :  { %v139_v20 = vmul.f32 %v181_v9, %v131_v16  ;;  %v102_v21 = vmul.f32 0.5, %v101_v17 }
 0x110   :  { %v137_v22 = vmul.f32 %v181_v9, %v129_v18  ;;  %v123_v23 = vsub.f32 1.5, %v122_v19 }
 0x111   :  { %v147_v24 = vadd.f32 %v182_v14, %v139_v20  ;;  %v103_v25 = vsub.f32 1.5, %v102_v21 }
 0x112   :  { %v145_v26 = vadd.f32 %v182_v14, %v137_v22  ;;  %v124_v27 = vmul.f32 %v190_v4, %v123_v23 }
 0x113   :  { %v151_v28 = vpack.c.bf16 %v147_v24, %v147_v24  ;;  %v104_v29 = vmul.f32 %v192_v6, %v103_v25 }
 0x114   :  { %v149_v30 = vpack.c.bf16 %v145_v26, %v145_v26  ;;  %v128_v31 = vsel %vm127_vm12, %v190_v4, %v124_v27 }
 0x115   :  { %156 = vst.msk [vmem:[%s285_s4 + $0x8] sm:$0xf] %vm153_vm10, %v151_v28  ;;  %v132_v32 = vmul.f32 %v128_v31, %v245_v41  ;;  %v108_v33 = vsel %vm107_vm14, %v192_v6, %v104_v29 }
 0x116   :  { %154 = vst.msk [vmem:[%s285_s4] sm:$0xf] %vm153_vm10, %v149_v30  ;;  %v130_v34 = vmul.f32 %v108_v33, %v247_v42 }
 0x117   :  { %v140_v35 = vmul.f32 %v181_v9, %v132_v32 }
 0x118   :  { %v138_v36 = vmul.f32 %v181_v9, %v130_v34 }
 0x119   :  { %v148_v37 = vadd.f32 %v182_v14, %v140_v35 }
 0x11a   :  { %v146_v38 = vadd.f32 %v182_v14, %v138_v36 }
 0x11b   :  { %v152_v39 = vpack.c.bf16 %v148_v37, %v148_v37 }
 0x11c   :  { %v150_v40 = vpack.c.bf16 %v146_v38, %v146_v38 }
 0x11d   :  { %157 = vst.msk [vmem:[%s285_s4 + $0xc] sm:$0xf] %vm153_vm10, %v152_v39 }
 0x11e   :  { %155 = vst.msk [vmem:[%s285_s4 + $0x4] sm:$0xf] %vm153_vm10, %v150_v40 }

// kernel: transformer_multi_scale_attention.23
= control target key start
LH: loop header
LB: loop body
LE: loop exit
PB: predicated region body
PF: predicated region fallthrough
CT: control target
= control target key end

     0   :  { %vm65_vm0 = vcmask 523264   ;;  %vm95_vm1 = vcmask 257024   ;;  %s194_s1 = inlined_call_operand.vmem [shape: bf16[64,32], index: 1, kind: input, shape index: {}]   ;;  %s195_s2 = inlined_call_operand.vmem [shape: f32[1,32], index: 2, kind: input, shape index: {}]   ;;  %s196_s0 = inlined_call_operand.vmem [shape: bf16[32,64], index: 0, kind: input, shape index: {}]   ;;  %s197_s3 = inlined_call_operand.vmem [shape: bf16[32,32], index: 3, kind: output, shape index: {}]  }
   0x1   :  { %v135_v0 = vld [vmem:[%s194_s1 + $0x18] sm:$0xff]  ;;  %v134_v1 = vld [vmem:[%s194_s1 + $0x10] sm:$0xff]  ;;  %v133_v2 = vld [vmem:[%s194_s1 + $0x8] sm:$0xff] }
   0x2   :  { %76 = vmatpush.bf16.msra.mxu0 %v135_v0  ;;  %136 = vmatpush.bf16.msra.mxu1 %v135_v0  ;;  %v132_v3 = vld [vmem:[%s194_s1] sm:$0xff]  ;;  %v131_v5 = vld [vmem:[%s196_s0 + $0x8] sm:$0xff] }
   0x3   :  { %v130_v4 = vld [vmem:[%s196_s0] sm:$0xff] }
   0x4   :  { %v140_v6 = vld [vmem:[%s195_s2] ss:$0 sm:$0xff] }
   0x6   :  { %77 = vmatpush.bf16.msra.mxu0 %v134_v1  ;;  %137 = vmatpush.bf16.msra.mxu1 %v134_v1 }
   0xa   :  { %78 = vmatpush.bf16.msra.mxu0 %v133_v2  ;;  %138 = vmatpush.bf16.msra.mxu1 %v133_v2 }
   0xe   :  { %79 = vmatpush.bf16.msra.mxu0 %v132_v3  ;;  %139 = vmatpush.bf16.msra.mxu1 %v132_v3 }
  0x11   :  { %128 = vmatmul.msk.bf16.vlgmr.msra.gmra.mxu0 %vm65_vm0, %v130_v4  ;;  %129 = vmatmul.msk.bf16.vlgmr.msra.gmra.mxu1 %vm65_vm0, %v131_v5 }
  0x8e   :  { %v81_v7 = vpop.f32.mrf.mxu0  ;;  %v86_v8 = vpop.f32.mrf.mxu1 }
  0x8f   :  { %v82_v9 = vadd.f32 %v140_v6, %v81_v7  ;;  %v87_v10 = vadd.f32 %v140_v6, %v86_v8 }
  0x91   :  { %v91_v11 = vpack.c.bf16 %v82_v9, %v82_v9  ;;  %v93_v12 = vpack.c.bf16 %v87_v10, %v87_v10 }
  0x93   :  { %96 = vst.msk [vmem:[%s197_s3] sm:$0xf] %vm95_vm1, %v91_v11 }
  0x94   :  { %98 = vst.msk [vmem:[%s197_s3 + $0x8] sm:$0xf] %vm95_vm1, %v93_v12 }
  0x96   :  { %v83_v13 = vpop.f32.mrf.mxu0  ;;  %v88_v14 = vpop.f32.mrf.mxu1 }
  0x97   :  { %v84_v15 = vadd.f32 %v140_v6, %v83_v13  ;;  %v89_v16 = vadd.f32 %v140_v6, %v88_v14 }
  0x99   :  { %v92_v17 = vpack.c.bf16 %v84_v15, %v84_v15  ;;  %v94_v18 = vpack.c.bf16 %v89_v16, %v89_v16 }
  0x9b   :  { %97 = vst.msk [vmem:[%s197_s3 + $0x4] sm:$0xf] %vm95_vm1, %v92_v17 }
  0x9c   :  { %99 = vst.msk [vmem:[%s197_s3 + $0xc] sm:$0xf] %vm95_vm1, %v94_v18 }

// kernel: transformer_multi_scale_attention.32
= control target key start
LH: loop header
LB: loop body
LE: loop exit
PB: predicated region body
PF: predicated region fallthrough
CT: control target
= control target key end

     0   :  { %vm49_vm0 = vcmask 261120   ;;  %vm75_vm1 = vcmask 130048   ;;  %s156_s1 = inlined_call_operand.vmem [shape: bf16[32,16], index: 1, kind: input, shape index: {}]   ;;  %s157_s2 = inlined_call_operand.vmem [shape: f32[1,16], index: 2, kind: input, shape index: {}]   ;;  %s158_s0 = inlined_call_operand.vmem [shape: bf16[32,32], index: 0, kind: input, shape index: {}]   ;;  %s159_s3 = inlined_call_operand.vmem [shape: f32[32,16], index: 3, kind: output, shape index: {}]  }
   0x1   :  { %v105_v0 = vld [vmem:[%s156_s1 + $0x8] sm:$0xff]  ;;  %v104_v1 = vld [vmem:[%s156_s1] sm:$0xff] }
   0x2   :  { %62 = vmatpush.bf16.msra.mxu0 %v105_v0  ;;  %106 = vmatpush.bf16.msra.mxu1 %v105_v0  ;;  %v102_v2 = vld [vmem:[%s158_s0] sm:$0xff]  ;;  %v103_v3 = vld [vmem:[%s158_s0 + $0x8] sm:$0xff] }
   0x3   :  { %v108_v4 = vld [vmem:[%s157_s2] ss:$0 sm:$0xff] }
   0x6   :  { %63 = vmatpush.bf16.msra.mxu0 %v104_v1  ;;  %107 = vmatpush.bf16.msra.mxu1 %v104_v1 }
   0x9   :  { %100 = vmatmul.msk.bf16.vlgmr.msra.gmra.mxu0 %vm49_vm0, %v102_v2  ;;  %101 = vmatmul.msk.bf16.vlgmr.msra.gmra.mxu1 %vm49_vm0, %v103_v3 }
  0x86   :  { %v65_v5 = vpop.f32.mrf.mxu0  ;;  %v70_v6 = vpop.f32.mrf.mxu1 }
  0x87   :  { %v66_v7 = vadd.f32 %v108_v4, %v65_v5  ;;  %v71_v8 = vadd.f32 %v108_v4, %v70_v6 }
  0x89   :  { %76 = vst.msk [vmem:[%s159_s3] sm:$0xff] %vm75_vm1, %v66_v7 }
  0x8a   :  { %78 = vst.msk [vmem:[%s159_s3 + $0x10] sm:$0xff] %vm75_vm1, %v71_v8 }
  0x8e   :  { %v67_v9 = vpop.f32.mrf.mxu0  ;;  %v72_v10 = vpop.f32.mrf.mxu1 }
  0x8f   :  { %v68_v11 = vadd.f32 %v108_v4, %v67_v9  ;;  %v73_v12 = vadd.f32 %v108_v4, %v72_v10 }
  0x91   :  { %77 = vst.msk [vmem:[%s159_s3 + $0x8] sm:$0xff] %vm75_vm1, %v68_v11 }
  0x92   :  { %79 = vst.msk [vmem:[%s159_s3 + $0x18] sm:$0xff] %vm75_vm1, %v73_v12 }

// kernel: transformer_multi_scale_attention.33
= control target key start
LH: loop header
LB: loop body
LE: loop exit
PB: predicated region body
PF: predicated region fallthrough
CT: control target
= control target key end

     0   :  { %s155_s0 = inlined_call_operand.vmem [shape: f32[16,16], index: 0, kind: input, shape index: {}]   ;;  %s156_s1 = inlined_call_operand.vmem [shape: f32[16,16], index: 1, kind: input, shape index: {}]   ;;  %s157_s2 = inlined_call_operand.hbm [shape: f32[16,16], index: 2, kind: output, shape index: {}]  }
   0x1   :  { %v12_v0 = vld [vmem:[%s155_s0] sm:$0xff]  ;;  %v13_v2 = vld [vmem:[%s155_s0 + $0x8] sm:$0xff] }
   0x2   :  { %v14_v1 = vld [vmem:[%s156_s1] sm:$0xff]  ;;  %v15_v4 = vld [vmem:[%s156_s1 + $0x8] sm:$0xff] }
   0x3   :  { %v16_v3 = vadd.f32 %v14_v1, %v12_v0 }
   0x4   :  { %7 = vsyncpa [#allocation3], 0  ;;  %v17_v5 = vadd.f32 %v15_v4, %v13_v2  ;;  %s116_s0 = smov [#allocation2]   ;;  %s65_s19 = sshll.u32 %s157_s2, 4  ;;  %vm56_vm7 = vcmask 130048   ;;  %s66_s19 = int_to_ptr.hbm [resolvable:$true] %s65_s19 }
   0x5   :  { %v77_v6 = vmul.f32 -1.442695, %v16_v3  ;;  %s63_s1 = sshll.u32 %s116_s0, 4  ;;  %s117_s20 = smov 128   ;;  %s64_s1 = int_to_ptr.vmem [resolvable:$true] %s63_s1 }
   0x6   :  { %v78_v7 = vmul.f32 -1.442695, %v17_v5  ;;  %s118_s21 = smov 8  }
   0x7   :  { %82 = vpow2.f32 %v77_v6 }
   0x8   :  { %84 = vpow2.f32 %v78_v7 }
   0xd   :  { %v83_v8 = vpop.eup %82 }
   0xe   :  { %v85_v9 = vpop.eup %84  ;;  %v24_v10 = vadd.f32 1.0, %v83_v8 }
   0xf   :  { %v25_v11 = vadd.f32 1.0, %v85_v9 }
  0x10   :  { %86 = vrcp.f32 %v24_v10  ;;  %vm31_vm0 = vweird.f32 %v24_v10  ;;  %v37_v15 = vand.u32 2147483648, %v24_v10  ;;  %v35_v18 = vand.u32 2147483647, %v24_v10 }
  0x11   :  { %88 = vrcp.f32 %v25_v11  ;;  %v52_v19 = vand.u32 2147483648, %v25_v11  ;;  %vm46_vm2 = vweird.f32 %v25_v11  ;;  %v50_v21 = vand.u32 2147483647, %v25_v11 }
  0x12   :  { %v38_v24 = vor.u32 1.1754944e-38, %v37_v15  ;;  %vm36_vm5 = vcmp.eq.f32.partialorder %v35_v18, 8.507059e+37 }
  0x13   :  { %v53_v27 = vor.u32 1.1754944e-38, %v52_v19  ;;  %vm51_vm8 = vcmp.eq.f32.partialorder %v50_v21, 8.507059e+37 }
  0x16   :  { %v87_v12 = vpop.eup %86 }
  0x17   :  { %v89_v13 = vpop.eup %88  ;;  %v27_v14 = vmul.f32 %v87_v12, %v24_v10  ;;  %vm32_vm1 = vweird.f32 %v87_v12 }
  0x18   :  { %v42_v16 = vmul.f32 %v89_v13, %v25_v11  ;;  %vm47_vm3 = vweird.f32 %v89_v13  ;;  %vm146_vm4 = vmor %vm31_vm0, %vm32_vm1 }
  0x19   :  { %v28_v17 = vsub.f32 1.0, %v27_v14  ;;  %vm48_vm6 = vmor %vm46_vm2, %vm47_vm3 }
  0x1a   :  { %v43_v20 = vsub.f32 1.0, %v42_v16 }
  0x1b   :  { %v29_v22 = vmul.f32 %v87_v12, %v28_v17 }
  0x1c   :  { %v44_v25 = vmul.f32 %v89_v13, %v43_v20 }
  0x1d   :  { %v30_v26 = vadd.f32 %v87_v12, %v29_v22 }
  0x1e   :  { %v45_v28 = vadd.f32 %v89_v13, %v44_v25 }
  0x1f   :  { %v34_v29 = vsel %vm146_vm4, %v87_v12, %v30_v26 }
  0x20   :  { %v39_v30 = vsel %vm36_vm5, %v38_v24, %v34_v29  ;;  %v49_v31 = vsel %vm48_vm6, %v89_v13, %v45_v28 }
  0x21   :  { %57 = vst.msk [vmem:[#allocation2] sm:$0xff] %vm56_vm7, %v39_v30  ;;  %v54_v32 = vsel %vm51_vm8, %v53_v27, %v49_v31 }
  0x22   :  { %58 = vst.msk [vmem:[#allocation2 + $0x8] sm:$0xff] %vm56_vm7, %v54_v32 }
  0x23   :  { %71 = dma.vmem_to_hbm [thread:$0]  %s64_s1, 256, %s66_s19, [#allocation3], %s117_s20, %s117_s20, %s118_s21  }
  0x24   :  { %114 = dma.done.wait [#allocation3], 256  }
  0x25   :  { %115 = vsyncadd [#allocation3], 4294967040 }
  0x26   :  { %76 = vsyncpa [#allocation3], 1 }

</bundles_post_ra>
